<compile_context>
chip_gen: v7x
topology: tpu7x:2x2x1
jax: 0.10.0
libtpu: 0.0.40
codegen_flags: <defaults>
</compile_context>

<pallas_src>
import jax
import jax.numpy as jnp
from jax.experimental import pallas as pl
from jax.experimental.pallas import tpu as pltpu


def _round_up(x, m):
    return ((x + m - 1) // m) * m


# ---------------------------------------------------------------------------
# Kernels
# ---------------------------------------------------------------------------
def _tail(w, msg_bf16, pre_vec_ref, wx1_ref, bx1_ref, wh1_ref, bh1_ref,
          w2_ref, bh2_ref, bx2_ref, out_ref):
    """Shared tail: ht = w_h(pre_vec) + w_x(msg) * w, second layers fused."""
    # First layers (MXU, f32 accumulate) + bias + ReLU (VPU, f32).
    hx = jnp.maximum(
        jnp.dot(msg_bf16, wx1_ref[...], preferred_element_type=jnp.float32)
        + bx1_ref[...], 0.0)
    hh = jnp.maximum(
        jnp.dot(pre_vec_ref[...], wh1_ref[...],
                preferred_element_type=jnp.float32)
        + bh1_ref[...], 0.0)

    # Scale the w_x branch by w on the VPU, then one fused K=2h matmul:
    #   [hh, w*hx] @ [wh2; wx2] == hh @ wh2 + w*hx @ wx2
    combo = jnp.concatenate(
        [hh.astype(jnp.bfloat16), (hx * w).astype(jnp.bfloat16)], axis=-1)
    out = (jnp.dot(combo, w2_ref[...], preferred_element_type=jnp.float32)
           + bh2_ref[...] + w * bx2_ref[...])
    out_ref[...] = out.astype(out_ref.dtype)


def _agg_gru_enc_kernel_cat(w_ref,                       # (1,1) f32, SMEM
                            d_vec_ref, pre_vec_ref, xcat_ref,   # activations
                            wm1_ref, bm1_ref, wm2_ref, bm2_ref,  # msg MLP
                            wx1_ref, bx1_ref, wh1_ref, bh1_ref,  # layer-1's
                            w2_ref, bh2_ref, bx2_ref,            # fused layer-2
                            out_ref):
    del d_vec_ref  # msg path uses the pre-concatenated (B, 2d) input
    w = w_ref[0, 0]
    # msg MLP: single full-depth (TILE_B, 2d) @ (2d, h) matmul.
    m1 = (jnp.dot(xcat_ref[...], wm1_ref[...],
                  preferred_element_type=jnp.float32) + bm1_ref[...])
    m1 = jnp.maximum(m1, 0.0).astype(jnp.bfloat16)
    msg = (jnp.dot(m1, wm2_ref[...], preferred_element_type=jnp.float32)
           + bm2_ref[...]).astype(jnp.bfloat16)
    _tail(w, msg, pre_vec_ref, wx1_ref, bx1_ref, wh1_ref, bh1_ref,
          w2_ref, bh2_ref, bx2_ref, out_ref)


def _agg_gru_enc_kernel_nocat(w_ref,
                              d_vec_ref, pre_vec_ref,
                              wx1_ref, bx1_ref, wh1_ref, bh1_ref,
                              w2_ref, bh2_ref, bx2_ref,
                              out_ref):
    w = w_ref[0, 0]
    msg = d_vec_ref[...]
    _tail(w, msg, pre_vec_ref, wx1_ref, bx1_ref, wh1_ref, bh1_ref,
          w2_ref, bh2_ref, bx2_ref, out_ref)


# ---------------------------------------------------------------------------
# Wrapper
# ---------------------------------------------------------------------------
def aggregate_gru_enc(params, d_vec, pre_vec, cur_d_vec, w=1.0,
                      cat_msg=False, tile_b=128):
    """Pallas implementation of AggregateGRUEnc.forward.

    params: dict of pre-transposed (in, out) f32 weights (see make_params).
    cat_msg: static python bool (mirrors the python-level branch in torch).
    """
    B, d = d_vec.shape
    h = params["wx1"].shape[1]
    bf = jnp.bfloat16
    f32 = jnp.float32

    # Batch tiling (pad to a multiple of the tile so every block is full).
    tile_b = min(tile_b, _round_up(B, 16))
    Bp = _round_up(B, tile_b)
    pad = Bp - B

    d_vec_b = jnp.pad(d_vec, ((0, pad), (0, 0))).astype(bf)
    pre_vec_b = jnp.pad(pre_vec, ((0, pad), (0, 0))).astype(bf)
    w_arr = jnp.full((1, 1), w, dtype=f32)

    # Fused second-layer weight: [wh2; wx2] -> (2h, d), bf16.
    w2_stacked = jnp.concatenate([params["wh2"], params["wx2"]],
                                 axis=0).astype(bf)

    # --- BlockSpecs -------------------------------------------------------
    act_spec = pl.BlockSpec((tile_b, d), lambda i: (i, 0))
    out_spec = pl.BlockSpec((tile_b, d), lambda i: (i, 0))
    smem_spec = pl.BlockSpec((1, 1), lambda i: (0, 0),
                             memory_space=pltpu.MemorySpace.SMEM)

    def resident_spec(arr):  # whole array, constant block index -> stays in VMEM
        return pl.BlockSpec(arr.shape, lambda i, _nd=arr.ndim: (0,) * _nd)

    common_weights = [
        params["wx1"].astype(bf), params["bx1"].astype(f32),
        params["wh1"].astype(bf), params["bh1"].astype(f32),
        w2_stacked, params["bh2"].astype(f32), params["bx2"].astype(f32),
    ]

    if cat_msg:
        x_cat = jnp.concatenate([cur_d_vec, d_vec], axis=1)
        x_cat = jnp.pad(x_cat, ((0, pad), (0, 0))).astype(bf)
        msg_weights = [
            params["wm1"].astype(bf), params["bm1"].astype(f32),
            params["wm2"].astype(bf), params["bm2"].astype(f32),
        ]
        operands = [w_arr, d_vec_b, pre_vec_b, x_cat] + msg_weights + common_weights
        in_specs = ([smem_spec, act_spec, act_spec,
                     pl.BlockSpec((tile_b, 2 * d), lambda i: (i, 0))]
                    + [resident_spec(a) for a in msg_weights + common_weights])
        kernel = _agg_gru_enc_kernel_cat
        flops = 2 * Bp * d * h * 7          # msg(2dh + hd) + 2*dh + 2hd
    else:
        operands = [w_arr, d_vec_b, pre_vec_b] + common_weights
        in_specs = ([smem_spec, act_spec, act_spec]
                    + [resident_spec(a) for a in common_weights])
        kernel = _agg_gru_enc_kernel_nocat
        flops = 2 * Bp * d * h * 4          # 2 first layers + fused second layer

    bytes_accessed = (sum(int(a.size) * a.dtype.itemsize for a in operands)
                      + Bp * d * 4)
    cost = pl.CostEstimate(flops=int(flops), transcendentals=0,
                           bytes_accessed=int(bytes_accessed))

    out = pl.pallas_call(
        kernel,
        out_shape=jax.ShapeDtypeStruct((Bp, d), f32),
        grid=(Bp // tile_b,),
        in_specs=in_specs,
        out_specs=out_spec,
        compiler_params=pltpu.CompilerParams(
            dimension_semantics=("parallel",)),
        cost_estimate=cost,
    )(*operands)
    return out[:B]


# ---------------------------------------------------------------------------
# Parameters & reference
# ---------------------------------------------------------------------------
def make_params(key, d, h):
    """Deterministic synthetic parameters (same shapes as the torch module,
    weights pre-transposed to (in_features, out_features))."""
    ks = jax.random.split(key, 12)
    scale = 0.05

    def lin(k, fi, fo):
        return scale * jax.random.normal(k, (fi, fo), jnp.float32)

    def bias(k, n):
        return scale * jax.random.normal(k, (1, n), jnp.float32)

    return {
        "wx1": lin(ks[0], d, h), "bx1": bias(ks[1], h),
        "wx2": lin(ks[2], h, d), "bx2": bias(ks[3], d),
        "wh1": lin(ks[4], d, h), "bh1": bias(ks[5], h),
        "wh2": lin(ks[6], h, d), "bh2": bias(ks[7], d),
        "wm1": lin(ks[8], 2 * d, h), "bm1": bias(ks[9], h),
        "wm2": lin(ks[10], h, d), "bm2": bias(ks[11], d),
    }


def reference(params, d_vec, pre_vec, cur_d_vec, w, cat_msg):
    """Plain-JAX f32 reference mirroring the torch forward."""
    def mlp(x, w1, b1, w2, b2):
        return jnp.maximum(x @ w1 + b1, 0.0) @ w2 + b2

    if cat_msg:
        x = jnp.concatenate([cur_d_vec, d_vec], axis=1)
        msg = mlp(x, params["wm1"], params["bm1"], params["wm2"], params["bm2"])
    else:
        msg = d_vec
    ht = (mlp(pre_vec, params["wh1"], params["bh1"], params["wh2"], params["bh2"])
          + mlp(msg, params["wx1"], params["bx1"], params["wx2"], params["bx2"]) * w)
    return ht


if __name__ == "__main__":
    # Tile-aligned analogue of the module's (d=100, h=300); batch fills the MXU.
    B, d, h = 256, 128, 256

    key = jax.random.PRNGKey(0)
    k_p, k_d, k_pre, k_cur = jax.random.split(key, 4)
    params = make_params(k_p, d, h)

    d_vec = jax.random.normal(k_d, (B, d), jnp.float32)
    pre_vec = jax.random.normal(k_pre, (B, d), jnp.float32)
    cur_d_vec = jax.random.normal(k_cur, (B, d), jnp.float32)
    w = 0.75

    ok = True
    for cat_msg in (False, True):
        out = aggregate_gru_enc(params, d_vec, pre_vec, cur_d_vec,
                                w=w, cat_msg=cat_msg, tile_b=128)
        out = jax.block_until_ready(out)
        ref = reference(params, d_vec, pre_vec, cur_d_vec, w, cat_msg)
        # bf16 matmuls (f32 accumulation) vs f32 reference -> loose-ish tol.
        ok = ok and bool(jnp.allclose(out, ref, atol=2e-2, rtol=2e-2))

    if ok:
        print("KERNEL_OK")
    else:
        print("KERNEL_MISMATCH")
</pallas_src>

<mosaic_0001>
module attributes {stable_mosaic.version = 11 : i64} {
  func.func @_agg_gru_enc_kernel_nocat(%arg0: i32, %arg1: memref<1x1xf32, #tpu.memory_space<smem>>, %arg2: memref<128x128xbf16, #tpu.memory_space<vmem>>, %arg3: memref<128x128xbf16, #tpu.memory_space<vmem>>, %arg4: memref<128x256xbf16, #tpu.memory_space<vmem>>, %arg5: memref<1x256xf32, #tpu.memory_space<vmem>>, %arg6: memref<128x256xbf16, #tpu.memory_space<vmem>>, %arg7: memref<1x256xf32, #tpu.memory_space<vmem>>, %arg8: memref<512x128xbf16, #tpu.memory_space<vmem>>, %arg9: memref<1x128xf32, #tpu.memory_space<vmem>>, %arg10: memref<1x128xf32, #tpu.memory_space<vmem>>, %arg11: memref<128x128xf32, #tpu.memory_space<vmem>>) attributes {dimension_semantics = [#tpu.dimension_semantics<parallel>], iteration_bounds = array<i64: 2>, scalar_prefetch = 0 : i64, scratch_operands = 0 : i64, tpu.core_type = #tpu.core_type<tc>, window_params = [{transform_indices = @transform_0, window_bounds = array<i64: 1, 1>}, {transform_indices = @transform_1, window_bounds = array<i64: 128, 128>}, {transform_indices = @transform_2, window_bounds = array<i64: 128, 128>}, {pipeline_mode = #tpu.pipeline_mode<synchronous>, transform_indices = @transform_3, window_bounds = array<i64: 128, 256>}, {pipeline_mode = #tpu.pipeline_mode<synchronous>, transform_indices = @transform_4, window_bounds = array<i64: 1, 256>}, {pipeline_mode = #tpu.pipeline_mode<synchronous>, transform_indices = @transform_5, window_bounds = array<i64: 128, 256>}, {pipeline_mode = #tpu.pipeline_mode<synchronous>, transform_indices = @transform_6, window_bounds = array<i64: 1, 256>}, {pipeline_mode = #tpu.pipeline_mode<synchronous>, transform_indices = @transform_7, window_bounds = array<i64: 512, 128>}, {pipeline_mode = #tpu.pipeline_mode<synchronous>, transform_indices = @transform_8, window_bounds = array<i64: 1, 128>}, {pipeline_mode = #tpu.pipeline_mode<synchronous>, transform_indices = @transform_9, window_bounds = array<i64: 1, 128>}, {transform_indices = @transform_10, window_bounds = array<i64: 128, 128>}]} {
    %c0 = arith.constant 0 : index
    %c0_0 = arith.constant 0 : index
    %0 = memref.load %arg1[%c0, %c0_0] : memref<1x1xf32, #tpu.memory_space<smem>>
    %c0_1 = arith.constant 0 : index
    %c0_2 = arith.constant 0 : index
    %1 = vector.load %arg2[%c0_1, %c0_2] : memref<128x128xbf16, #tpu.memory_space<vmem>>, vector<128x128xbf16>
    %c0_3 = arith.constant 0 : index
    %c0_4 = arith.constant 0 : index
    %2 = vector.load %arg4[%c0_3, %c0_4] : memref<128x256xbf16, #tpu.memory_space<vmem>>, vector<128x256xbf16>
    %cst = arith.constant dense<0.000000e+00> : vector<128x256xf32>
    %3 = tpu.matmul %1, %2, %cst {dimension_numbers = #tpu.dot_dimension_numbers<[1], [0], [0], [1], [0, 0, 1, 1], [], []>} : vector<128x128xbf16>, vector<128x256xbf16>, vector<128x256xf32> -> vector<128x256xf32>
    %c0_5 = arith.constant 0 : index
    %c0_6 = arith.constant 0 : index
    %4 = vector.load %arg5[%c0_5, %c0_6] : memref<1x256xf32, #tpu.memory_space<vmem>>, vector<1x256xf32>
    %5 = vector.broadcast %4 : vector<1x256xf32> to vector<128x256xf32>
    %6 = arith.addf %3, %5 : vector<128x256xf32>
    %cst_7 = arith.constant 0.000000e+00 : f32
    %7 = vector.broadcast %cst_7 : f32 to vector<128x256xf32>
    %8 = arith.maximumf %6, %7 : vector<128x256xf32>
    %c0_8 = arith.constant 0 : index
    %c0_9 = arith.constant 0 : index
    %9 = vector.load %arg3[%c0_8, %c0_9] : memref<128x128xbf16, #tpu.memory_space<vmem>>, vector<128x128xbf16>
    %c0_10 = arith.constant 0 : index
    %c0_11 = arith.constant 0 : index
    %10 = vector.load %arg6[%c0_10, %c0_11] : memref<128x256xbf16, #tpu.memory_space<vmem>>, vector<128x256xbf16>
    %cst_12 = arith.constant dense<0.000000e+00> : vector<128x256xf32>
    %11 = tpu.matmul %9, %10, %cst_12 {dimension_numbers = #tpu.dot_dimension_numbers<[1], [0], [0], [1], [0, 0, 1, 1], [], []>} : vector<128x128xbf16>, vector<128x256xbf16>, vector<128x256xf32> -> vector<128x256xf32>
    %c0_13 = arith.constant 0 : index
    %c0_14 = arith.constant 0 : index
    %12 = vector.load %arg7[%c0_13, %c0_14] : memref<1x256xf32, #tpu.memory_space<vmem>>, vector<1x256xf32>
    %13 = vector.broadcast %12 : vector<1x256xf32> to vector<128x256xf32>
    %14 = arith.addf %11, %13 : vector<128x256xf32>
    %cst_15 = arith.constant 0.000000e+00 : f32
    %15 = vector.broadcast %cst_15 : f32 to vector<128x256xf32>
    %16 = arith.maximumf %14, %15 : vector<128x256xf32>
    %17 = arith.truncf %16 : vector<128x256xf32> to vector<128x256xbf16>
    %18 = vector.broadcast %0 : f32 to vector<128x256xf32>
    %19 = arith.mulf %8, %18 : vector<128x256xf32>
    %20 = arith.truncf %19 : vector<128x256xf32> to vector<128x256xbf16>
    %21 = tpu.concatenate %17, %20 in 1 : vector<128x256xbf16>, vector<128x256xbf16> -> vector<128x512xbf16>
    %c0_16 = arith.constant 0 : index
    %c0_17 = arith.constant 0 : index
    %22 = vector.load %arg8[%c0_16, %c0_17] : memref<512x128xbf16, #tpu.memory_space<vmem>>, vector<512x128xbf16>
    %cst_18 = arith.constant dense<0.000000e+00> : vector<128x128xf32>
    %23 = tpu.matmul %21, %22, %cst_18 {dimension_numbers = #tpu.dot_dimension_numbers<[1], [0], [0], [1], [0, 0, 1, 1], [], []>} : vector<128x512xbf16>, vector<512x128xbf16>, vector<128x128xf32> -> vector<128x128xf32>
    %c0_19 = arith.constant 0 : index
    %c0_20 = arith.constant 0 : index
    %24 = vector.load %arg9[%c0_19, %c0_20] : memref<1x128xf32, #tpu.memory_space<vmem>>, vector<1x128xf32>
    %25 = vector.broadcast %24 : vector<1x128xf32> to vector<128x128xf32>
    %26 = arith.addf %23, %25 : vector<128x128xf32>
    %c0_21 = arith.constant 0 : index
    %c0_22 = arith.constant 0 : index
    %27 = vector.load %arg10[%c0_21, %c0_22] : memref<1x128xf32, #tpu.memory_space<vmem>>, vector<1x128xf32>
    %28 = vector.broadcast %0 : f32 to vector<1x128xf32>
    %29 = arith.mulf %28, %27 : vector<1x128xf32>
    %30 = vector.broadcast %29 : vector<1x128xf32> to vector<128x128xf32>
    %31 = arith.addf %26, %30 : vector<128x128xf32>
    %c0_23 = arith.constant 0 : index
    %c0_24 = arith.constant 0 : index
    %32 = vector.load %arg11[%c0_23, %c0_24] : memref<128x128xf32, #tpu.memory_space<vmem>>, vector<128x128xf32>
    tpu.vector_store %arg11[%c0_23, %c0_24], %31 {strides = array<i32>} : memref<128x128xf32, #tpu.memory_space<vmem>>, vector<128x128xf32>,
    return
  }
  func.func @transform_0(%arg0: i32) -> (i32, i32) {
    %c0_i32 = arith.constant 0 : i32
    %c0_i32_0 = arith.constant 0 : i32
    %c0_i32_1 = arith.constant 0 : i32
    return %c0_i32, %c0_i32_0 : i32, i32
  }
  func.func @transform_1(%arg0: i32) -> (i32, i32) {
    %c0_i32 = arith.constant 0 : i32
    %c0_i32_0 = arith.constant 0 : i32
    return %arg0, %c0_i32 : i32, i32
  }
  func.func @transform_2(%arg0: i32) -> (i32, i32) {
    %c0_i32 = arith.constant 0 : i32
    %c0_i32_0 = arith.constant 0 : i32
    return %arg0, %c0_i32 : i32, i32
  }
  func.func @transform_3(%arg0: i32) -> (i32, i32) {
    %c0_i32 = arith.constant 0 : i32
    %c0_i32_0 = arith.constant 0 : i32
    %c0_i32_1 = arith.constant 0 : i32
    return %c0_i32, %c0_i32_0 : i32, i32
  }
  func.func @transform_4(%arg0: i32) -> (i32, i32) {
    %c0_i32 = arith.constant 0 : i32
    %c0_i32_0 = arith.constant 0 : i32
    %c0_i32_1 = arith.constant 0 : i32
    return %c0_i32, %c0_i32_0 : i32, i32
  }
  func.func @transform_5(%arg0: i32) -> (i32, i32) {
    %c0_i32 = arith.constant 0 : i32
    %c0_i32_0 = arith.constant 0 : i32
    %c0_i32_1 = arith.constant 0 : i32
    return %c0_i32, %c0_i32_0 : i32, i32
  }
  func.func @transform_6(%arg0: i32) -> (i32, i32) {
    %c0_i32 = arith.constant 0 : i32
    %c0_i32_0 = arith.constant 0 : i32
    %c0_i32_1 = arith.constant 0 : i32
    return %c0_i32, %c0_i32_0 : i32, i32
  }
  func.func @transform_7(%arg0: i32) -> (i32, i32) {
    %c0_i32 = arith.constant 0 : i32
    %c0_i32_0 = arith.constant 0 : i32
    %c0_i32_1 = arith.constant 0 : i32
    return %c0_i32, %c0_i32_0 : i32, i32
  }
  func.func @transform_8(%arg0: i32) -> (i32, i32) {
    %c0_i32 = arith.constant 0 : i32
    %c0_i32_0 = arith.constant 0 : i32
    %c0_i32_1 = arith.constant 0 : i32
    return %c0_i32, %c0_i32_0 : i32, i32
  }
  func.func @transform_9(%arg0: i32) -> (i32, i32) {
    %c0_i32 = arith.constant 0 : i32
    %c0_i32_0 = arith.constant 0 : i32
    %c0_i32_1 = arith.constant 0 : i32
    return %c0_i32, %c0_i32_0 : i32, i32
  }
  func.func @transform_10(%arg0: i32) -> (i32, i32) {
    %c0_i32 = arith.constant 0 : i32
    %c0_i32_0 = arith.constant 0 : i32
    return %arg0, %c0_i32 : i32, i32
  }
}

</mosaic_0001>

<bundles_post_ra>
// kernel: tpu_custom_call.1
= control target key start
LH: loop header
LB: loop body
LE: loop exit
PB: predicated region body
PF: predicated region fallthrough
CT: control target
= control target key end

     0   :  { %s3044_s0 = inlined_call_operand.<no memory space> [shape: f32[1,1], index: 0, kind: input, shape index: {}]   ;;  %s3045_s1 = inlined_call_operand.hbm [shape: bf16[256,128], index: 1, kind: input, shape index: {}]   ;;  %s3046_s2 = inlined_call_operand.hbm [shape: bf16[256,128], index: 2, kind: input, shape index: {}]   ;;  %s3047_s3 = inlined_call_operand.hbm [shape: bf16[128,256], index: 3, kind: input, shape index: {}]   ;;  %s3048_s4 = inlined_call_operand.vmem [shape: f32[1,256], index: 4, kind: input, shape index: {}]   ;;  %s3049_s5 = inlined_call_operand.hbm [shape: bf16[128,256], index: 5, kind: input, shape index: {}]   ;;  %s3050_s6 = inlined_call_operand.vmem [shape: f32[1,256], index: 6, kind: input, shape index: {}]   ;;  %s3051_s7 = inlined_call_operand.hbm [shape: bf16[512,128], index: 7, kind: input, shape index: {}]   ;;  %s3052_s8 = inlined_call_operand.vmem [shape: f32[1,128], index: 8, kind: input, shape index: {}]   ;;  %s3053_s9 = inlined_call_operand.vmem [shape: f32[1,128], index: 9, kind: input, shape index: {}]   ;;  %s3054_s10 = inlined_call_operand.hbm [shape: f32[256,128], index: 10, kind: output, shape index: {}]  }
   0x1   :  { %3065 = sst [smem:[#allocation21_spill]] %s3045_s1 }
   0x2   :  { %3066 = sst [smem:[#allocation22_spill]] %s3047_s3 }
   0x3   :  { %3067 = sst [smem:[#allocation23_spill]] %s3049_s5 }
   0x4   :  { %3068 = sst [smem:[#allocation24_spill]] %s3051_s7 }
   0x5   :  { %3069 = sst [smem:[#allocation25_spill]] %s3054_s10 }
   0x6   :  { %15 = sst [smem:[#allocation2]] %s3044_s0 }
   0x7   :  { %16 = vsyncpa [#allocation4], 0 }
   0x8   :  { %18 = vsyncpa [#allocation4 + $0x1], 0 }
   0x9   :  { %19 = vsyncpa [#allocation7], 0 }
   0xa   :  { %21 = vsyncpa [#allocation7 + $0x1], 0 }
   0xb   :  { %22 = vsyncpa [#allocation10], 0 }
   0xc   :  { %23 = vsyncpa [#allocation5], 0 }
   0xd   :  { %25 = vsyncpa [#allocation5 + $0x1], 0  ;;  %s2517_s15 = smov 0   ;;  %s2519_s16 = smov 0  }
   0xe   :  { %s2521_s17 = smov 0   ;;  %s2523_s18 = smov 0  }
   0xf LB: > { %3070 = sst [smem:[#allocation18_spill]] %s2432_s15  ;;  %s2538_s0 = sadd.s32 4294967295, %s2444_s18   ;;  %s2444_s18 = sphi %s2523_s18, %s3102_s18   ;;  %s2440_s17 = sphi %s2521_s17, %s3101_s17   ;;  %s2436_s16 = sphi %s2519_s16, %s3100_s16   ;;  %s2432_s15 = sphi %s2517_s15, %s3099_s15  }
  0x10   : > { %s1801_s19 = sadd.s32 4294967294, %s2444_s18   ;;  %p72_p0 = scmp.ne.s32.totalorder %s2436_s16, %s2432_s15 }
  0x11   : > { %p3055_p1 = scmp.eq.s32.totalorder %s2538_s0, 0  ;;  %p275_p3 = scmp.eq.s32.totalorder %s1801_s19, 1 }
  0x12   : > { %p1802_p5 = scmp.ge.s32.totalorder %s2444_s18, 1  ;;  %p282_p7 = scmp.lt.s32.totalorder %s2444_s18, 3 }
  0x13   : > { %p2547_p4 = por %p3055_p1, %p72_p0  ;;  %p2552_p6 = por %p275_p3, %p72_p0 }
  0x14   : > { %p2557_p8 = pnand %p1802_p5, %p282_p7  ;;  %s2446_s23 = smov [#allocation8]  }
  0x15   : > { %s3071_s20 = scalar_select %p2547_p4, 1, 0 }
  0x16   : > { %s3072_s21 = scalar_select %p2552_p6, 1, 0 }
  0x17   : > { %s3074_s22 = scalar_select %p2557_p8, 1, 0 }
  0x18   : > { %3073 = sst [smem:[#allocation19_spill]] %s3072_s21  ;;  %s297_s24 = sshll.u32 %s2446_s23, 4  ;;  %s2561_s24 = int_to_ptr.vmem [resolvable:$true] %s297_s24 }
  0x19   : > { %p2055_p9 = pneg %p2557_p8  ;;  %s2447_s26 = smov [#allocation9]  }
  0x1a   : > { %s313_s27 = sshll.u32 %s2447_s26, 4  ;;  %s2448_s28 = smov [#allocation11]   ;;  %s2572_s27 = int_to_ptr.vmem [resolvable:$true] %s313_s27 }
  0x1b   : > { %p2568_p11 = pnand %p2055_p9, %p3055_p1  ;;  %s2574_s29 = sshll.u32 %s2448_s28, 4  ;;  %s330_s29 = int_to_ptr.vmem [resolvable:$true] %s2574_s29 }
  0x1c   : > { %s3076_s3 = sld [smem:[#allocation22_spill]] }
  0x1d   : > { %p2584_p13 = pneg %p2568_p11 }
  0x22   : > { %s2222_s12 = scalar_lea.hbm %s3076_s3, 2048 }
  0x23   : > { %p2223_p12 = scmp.ne.s32.totalorder %s3076_s3, %s2222_s12  ;;  %p2229_p5 = scmp.lt.u32.totalorder %s2222_s12, %s3076_s3 }
  0x25   : > { %p2225_p0 = pnand %p2584_p13, %p2223_p12 }
  0x27   : > { %p2226_p3 = pneg %p2225_p0 }
  0x29   : > { %p2231_p7 = pnand %p2229_p5, %p2226_p3 }
  0x2b   : > { %2234 = shalt.err (!%p2231_p7)
}
  0x2c   : > { %s2235_s28 = scalar_lea.vmem %s2561_s24, 2048  ;;  %p2243_p2 = scmp.lt.s32.totalorder %s2561_s24, %s2561_s24 }
  0x2d   : > { %p2236_p9 = scmp.ne.s32.totalorder %s2561_s24, %s2235_s28  ;;  %p2244_p6 = scmp.lt.s32.totalorder %s2235_s28, %s2235_s28 }
  0x2f   : > { %p2238_p10 = pnand %p2236_p9, %p2584_p13  ;;  %p2245_p12 = por %p2244_p6, %p2243_p2 }
  0x31   : > { %p2239_p1 = pneg %p2238_p10 }
  0x33   : > { %p2246_p0 = pnand %p2245_p12, %p2239_p1 }
  0x35   : > { %2249 = shalt.err (!%p2246_p0)
}
  0x36   : > { %s2449_s30 = smov 128   ;;  %s2450_s11 = smov 8  }
  0x37   : > { %2058 = dma.hbm_to_vmem [thread:$0]  (!%p2568_p11), %s3076_s3, 2048, %s2561_s24, [#allocation7], %s2449_s30, %s2449_s30, %s2450_s11  }
  0x38   : > { %s3078_s5 = sld [smem:[#allocation23_spill]] }
  0x3e   : > { %s2250_s26 = scalar_lea.hbm %s3078_s5, 2048 }
  0x3f   : > { %p2251_p2 = scmp.ne.s32.totalorder %s3078_s5, %s2250_s26  ;;  %p2257_p10 = scmp.lt.u32.totalorder %s2250_s26, %s3078_s5 }
  0x41   : > { %p2253_p1 = pnand %p2251_p2, %p2584_p13 }
  0x43   : > { %p2254_p6 = pneg %p2253_p1 }
  0x45   : > { %p2259_p3 = pnand %p2257_p10, %p2254_p6 }
  0x47   : > { %2262 = shalt.err (!%p2259_p3)
}
  0x48   : > { %s2263_s24 = scalar_lea.vmem %s2572_s27, 2048  ;;  %p2271_p12 = scmp.lt.s32.totalorder %s2572_s27, %s2572_s27 }
  0x49   : > { %p2264_p5 = scmp.ne.s32.totalorder %s2572_s27, %s2263_s24  ;;  %p2272_p0 = scmp.lt.s32.totalorder %s2263_s24, %s2263_s24 }
  0x4b   : > { %p2266_p7 = pnand %p2264_p5, %p2584_p13  ;;  %p2273_p2 = por %p2272_p0, %p2271_p12 }
  0x4d   : > { %p2267_p9 = pneg %p2266_p7 }
  0x4f   : > { %p2274_p1 = pnand %p2273_p2, %p2267_p9 }
  0x51   : > { %2277 = shalt.err (!%p2274_p1)
}
  0x52   : > { %2061 = dma.hbm_to_vmem [thread:$0]  (!%p2568_p11), %s3078_s5, 2048, %s2572_s27, [#allocation10], %s2449_s30, %s2449_s30, %s2450_s11  }
  0x53   : > { %s3079_s7 = sld [smem:[#allocation24_spill]] }
  0x59   : > { %s2278_s13 = scalar_lea.hbm %s3079_s7, 4096 }
  0x5a   : > { %p2279_p6 = scmp.ne.s32.totalorder %s3079_s7, %s2278_s13  ;;  %p2285_p5 = scmp.lt.u32.totalorder %s2278_s13, %s3079_s7 }
  0x5c   : > { %p2281_p10 = pnand %p2279_p6, %p2584_p13 }
  0x5e   : > { %p2282_p3 = pneg %p2281_p10 }
  0x60   : > { %p2287_p7 = pnand %p2285_p5, %p2282_p3 }
  0x62   : > { %2290 = shalt.err (!%p2287_p7)
}
  0x63   : > { %s2291_s24 = scalar_lea.vmem %s330_s29, 4096  ;;  %p2299_p2 = scmp.lt.s32.totalorder %s330_s29, %s330_s29 }
  0x64   : > { %p2292_p9 = scmp.ne.s32.totalorder %s330_s29, %s2291_s24  ;;  %p2300_p1 = scmp.lt.s32.totalorder %s2291_s24, %s2291_s24 }
  0x66   : > { %p2294_p12 = pnand %p2292_p9, %p2584_p13  ;;  %p2301_p4 = por %p2300_p1, %p2299_p2 }
  0x68   : > { %p2295_p0 = pneg %p2294_p12 }
  0x6a   : > { %p2302_p8 = pnand %p2301_p4, %p2295_p0 }
  0x6c   : > { %2305 = shalt.err (!%p2302_p8)
}
  0x6d   : > { %s3061_s27 = smov 64   ;;  %s3063_s19 = smov 4  }
  0x6e   : > { %2064 = dma.hbm_to_vmem [thread:$0]  (!%p2568_p11), %s3079_s7, 4096, %s330_s29, [#allocation10], %s3061_s27, %s3061_s27, %s3063_s19  }
  0x6f   : > { %s2651_s10 = sadd.s32 1, %s2444_s18   ;;  %s59_s21 = sadd.s32 1, %s2440_s17 }
  0x70   : > { %s56_s15 = ssub.s32 %s2444_s18, %s2651_s10  ;;  %p66_p8 = scmp.ne.s32.totalorder %s2440_s17, %s2436_s16 }
  0x71   : > { %p57_p4 = scmp.eq.s32.totalorder %s56_s15, 0  ;;  %p67_p13 = scmp.eq.s32.totalorder %s2444_s18, 0 }
  0x72   : > { %p2079_p6 = scmp.lt.s32.totalorder %s2444_s18, 2  ;;  %p3081_p3 = scmp.eq.s32.totalorder %s2538_s0, 1 }
  0x73   : > { %s2661_s12 = scalar_select %p57_p4, %s2440_s17, %s59_s21  }
  0x74   : > { %p68_p10 = por %p67_p13, %p66_p8  ;;  %p2665_p5 = por %p3081_p3, %p66_p8 }
  0x75   : > { %3080 = sst [smem:[#allocation20_spill]] %s2661_s12  ;;  %s349_s13 = sand.u32 1, %s2440_s17  }
  0x76   : > { %s1906_s14 = sshll.u32 %s2444_s18, 10  ;;  %s2671_s29 = sshll.u32 %s349_s13, 6 }
  0x77   : > { %s3083_s1 = sld [smem:[#allocation21_spill]]  ;;  %s353_s24 = scalar_lea.vmem [#allocation3], %s2671_s29 }
  0x78   : > { %s360_s30 = sshll.u32 %s353_s24, 4  ;;  %p2679_p11 = pnand %p2079_p6, %p68_p10  ;;  %s2683_s30 = int_to_ptr.vmem [resolvable:$true] %s360_s30 }
  0x79   : > { %s2688_s23 = scalar_lea.hbm %s3046_s2, %s1906_s14  ;;  %s2690_s26 = scalar_lea.sflag [#allocation4], %s349_s13 }
  0x7a   : > { %p2308_p9 = pneg %p2679_p11 }
  0x7d   : > { %s2676_s28 = scalar_lea.hbm %s3083_s1, %s1906_s14  ;;  %s2311_s3 = scalar_lea.hbm %s3083_s1, 2048 }
  0x7e   : > { %s2306_s27 = scalar_lea.hbm %s2676_s28, 1024  ;;  %p2312_p2 = scmp.lt.u32.totalorder %s2676_s28, %s3083_s1 }
  0x7f   : > { %p2307_p7 = scmp.ne.s32.totalorder %s2676_s28, %s2306_s27  ;;  %p2313_p1 = scmp.lt.u32.totalorder %s2311_s3, %s2306_s27 }
  0x80   : > { %p2315_p8 = scmp.lt.u32.totalorder %s2306_s27, %s2676_s28 }
  0x81   : > { %p2309_p12 = pnand %p2308_p9, %p2307_p7  ;;  %p2314_p4 = por %p2313_p1, %p2312_p2 }
  0x83   : > { %p2310_p0 = pneg %p2309_p12  ;;  %p2316_p13 = por %p2315_p8, %p2314_p4 }
  0x85   : > { %p2317_p6 = pnand %p2316_p13, %p2310_p0 }
  0x87   : > { %2320 = shalt.err (!%p2317_p6)
}
  0x88   : > { %s2321_s13 = scalar_lea.vmem %s2683_s30, 1024  ;;  %s2453_s19 = smov [#allocation3]  }
  0x89   : > { %p2322_p10 = scmp.ne.s32.totalorder %s2683_s30, %s2321_s13  ;;  %s2326_s14 = sshll.u32 %s2453_s19, 4  ;;  %s2327_s14 = int_to_ptr.vmem [resolvable:$false] %s2326_s14 }
  0x8a   : > { %s2328_s5 = scalar_lea.vmem %s2327_s14, 2048  ;;  %p2329_p12 = scmp.lt.s32.totalorder %s2683_s30, %s2327_s14 }
  0x8b   : > { %p2324_p3 = pnand %p2322_p10, %p2308_p9  ;;  %p2330_p2 = scmp.lt.s32.totalorder %s2328_s5, %s2321_s13 }
  0x8d   : > { %p2325_p7 = pneg %p2324_p3  ;;  %p2331_p1 = por %p2330_p2, %p2329_p12 }
  0x8f   : > { %p2332_p4 = pnand %p2331_p1, %p2325_p7 }
  0x91   : > { %2335 = shalt.err (!%p2332_p4)
}
  0x92   : > { %s3085_s3 = smov 4   ;;  %s3086_s7 = smov 64  }
  0x93   : > { %2068 = dma.hbm_to_vmem [thread:$0]  (!%p2679_p11), %s2676_s28, 1024, %s2683_s30, %s2690_s26, %s3086_s7, %s3086_s7, %s3085_s3  }
  0x94   : > { %s374_s27 = scalar_lea.vmem [#allocation6], %s2671_s29  ;;  %s370_s21 = sand.u32 1, %s2444_s18  }
  0x95   : > { %s381_s15 = sshll.u32 %s374_s27, 4  ;;  %s2725_s24 = scalar_lea.sflag [#allocation7], %s370_s21  ;;  %s2723_s15 = int_to_ptr.vmem [resolvable:$true] %s381_s15 }
  0x96   : > { %s2336_s13 = scalar_lea.hbm %s2688_s23, 1024  ;;  %s2341_s5 = scalar_lea.hbm %s3046_s2, 2048 }
  0x97   : > { %p2337_p0 = scmp.ne.s32.totalorder %s2688_s23, %s2336_s13  ;;  %p2342_p6 = scmp.lt.u32.totalorder %s2688_s23, %s3046_s2 }
  0x98   : > { %p2343_p10 = scmp.lt.u32.totalorder %s2341_s5, %s2336_s13  ;;  %p2345_p7 = scmp.lt.u32.totalorder %s2336_s13, %s2688_s23 }
  0x99   : > { %p2339_p8 = pnand %p2337_p0, %p2308_p9 }
  0x9a   : > { %p2344_p3 = por %p2343_p10, %p2342_p6 }
  0x9b   : > { %p2340_p13 = pneg %p2339_p8 }
  0x9c   : > { %p2346_p12 = por %p2345_p7, %p2344_p3 }
  0x9e   : > { %p2347_p2 = pnand %p2346_p12, %p2340_p13 }
  0xa0   : > { %2350 = shalt.err (!%p2347_p2)
}
  0xa1   : > { %s2351_s29 = scalar_lea.vmem %s2723_s15, 1024  ;;  %s2454_s28 = smov [#allocation6]  }
  0xa2   : > { %p2352_p1 = scmp.ne.s32.totalorder %s2723_s15, %s2351_s29  ;;  %s2356_s30 = sshll.u32 %s2454_s28, 4  ;;  %s2357_s30 = int_to_ptr.vmem [resolvable:$false] %s2356_s30 }
  0xa3   : > { %s2358_s1 = scalar_lea.vmem %s2357_s30, 2048  ;;  %p2359_p8 = scmp.lt.s32.totalorder %s2723_s15, %s2357_s30 }
  0xa4   : > { %p2354_p4 = pnand %p2352_p1, %p2308_p9  ;;  %p2360_p6 = scmp.lt.s32.totalorder %s2358_s1, %s2351_s29 }
  0xa6   : > { %p2355_p0 = pneg %p2354_p4  ;;  %p2361_p10 = por %p2360_p6, %p2359_p8 }
  0xa8   : > { %p2362_p3 = pnand %p2361_p10, %p2355_p0 }
  0xaa   : > { %2365 = shalt.err (!%p2362_p3)
}
  0xab   : > { %2071 = dma.hbm_to_vmem [thread:$0]  (!%p2679_p11), %s2688_s23, 1024, %s2723_s15, %s2725_s24, %s3086_s7, %s3086_s7, %s3085_s3  }
  0xac   : > { %p3087_p9 = scmp.ne.s32.totalorder %s3074_s22, 0 }
  0xad   : > { %s2757_s12 = sand.u32 (!%p3087_p9), 1, %s2436_s16   ;;  %p3088_p13 = scmp.ne.s32.totalorder (!%p3087_p9), %s3071_s20, 0 }
  0xae   : > { %393 = sbr.rel (%p3087_p9) target bundleno = 742 (0x2e6), region = 60  ;;  %s1814_s26 = sshll.u32 (!%p3087_p9), %s2757_s12, 6 }
  0xaf   : > { %s396_s27 = scalar_lea.sflag (!%p3087_p9), [#allocation4], %s2757_s12  ;;  %s2761_s21 = scalar_lea.vmem (!%p3087_p9), [#allocation3], %s1814_s26 }
  0xb5   : > { %2411 = dma.done.wait (%p3088_p13), %s396_s27, 1024  }
  0xb6   : > { %2413 = vsyncadd (%p3088_p13), %s396_s27, 4294966272  ;;  %s404_s11 = sand.u32 1, %s2538_s0   ;;  %s2768_s23 = scalar_lea.vmem [#allocation6], %s1814_s26 }
  0xb7   : > { %s405_s22 = scalar_lea.sflag [#allocation7], %s404_s11 }
  0xb8   : > { %2415 = dma.done.wait (%p3088_p13), %s405_s22, 1024  }
  0xb9   : > { %2417 = vsyncadd (%p3088_p13), %s405_s22, 4294966272  ;;  %p3089_p11 = scmp.eq.s32.totalorder %s2538_s0, 0 }
  0xbb   : > { %2419 = dma.done.wait (%p3089_p11), [#allocation7], 2048   ;;  %p3090_p7 = pmov %p3089_p11 }
  0xbd   : > { %2421 = vsyncadd (%p3090_p7), [#allocation7], 4294965248  ;;  %p3091_p12 = pmov %p3090_p7 }
  0xbe   : > { %p3092_p2 = pmov %p3090_p7 }
  0xbf   : > { %2423 = dma.done.wait (%p3091_p12), [#allocation10], 6144  }
  0xc0   : > { %2425 = vsyncadd (%p3092_p2), [#allocation10], 4294961152  ;;  %v2455_v0 = vmov 0   ;;  %v2126_v1 = vld [vmem:[#allocation8 + $0x4] ss:$8 sps:$4 sm:$0xff]   ;;  %v2178_v44 = vld [vmem:[%s2761_s21 + $0x10] sm:$0xff]  }
  0xc1   : > { %671 = vmatprep.mubr.bf16.mxu0 %v2455_v0  ;;  %988 = vmatprep.mubr.bf16.mxu1 %v2455_v0  ;;  %v2128_v2 = vld [vmem:[#allocation9 + $0x4] ss:$8 sps:$4 sm:$0xff]   ;;  %v2130_v3 = vld [vmem:[#allocation8] ss:$8 sps:$4 sm:$0xff]   ;;  %v2132_v5 = vld [vmem:[#allocation8 + $0x14] ss:$8 sps:$4 sm:$0xff]  }
  0xc2   : > { %639 = vmatprep.subr.bf16.mxu0 %v2126_v1  ;;  %v2131_v4 = vld [vmem:[#allocation9] ss:$8 sps:$4 sm:$0xff]   ;;  %956 = vmatprep.subr.bf16.mxu1 %v2128_v2  ;;  %v2134_v6 = vld [vmem:[#allocation9 + $0x14] ss:$8 sps:$4 sm:$0xff]   ;;  %v2136_v7 = vld [vmem:[#allocation8 + $0x10] ss:$8 sps:$4 sm:$0xff]  }
  0xc3   : > { %640 = vmatpush1.bf16.msra.mxu0 %v2130_v3  ;;  %957 = vmatpush1.bf16.msra.mxu1 %v2131_v4  ;;  %v2137_v8 = vld [vmem:[#allocation9 + $0x10] ss:$8 sps:$4 sm:$0xff]   ;;  %v2138_v9 = vld [vmem:[#allocation8 + $0x24] ss:$8 sps:$4 sm:$0xff]   ;;  %v2142_v11 = vld [vmem:[#allocation8 + $0x20] ss:$8 sps:$4 sm:$0xff]  }
  0xc4   : > { %641 = vmatprep.subr.bf16.mxu0 %v2132_v5  ;;  %958 = vmatprep.subr.bf16.mxu1 %v2134_v6  ;;  %v2140_v10 = vld [vmem:[#allocation9 + $0x24] ss:$8 sps:$4 sm:$0xff]   ;;  %v2143_v12 = vld [vmem:[#allocation9 + $0x20] ss:$8 sps:$4 sm:$0xff]   ;;  %v2144_v13 = vld [vmem:[#allocation8 + $0x34] ss:$8 sps:$4 sm:$0xff]  }
  0xc5   : > { %v2146_v14 = vld [vmem:[#allocation9 + $0x34] ss:$8 sps:$4 sm:$0xff]   ;;  %v2148_v15 = vld [vmem:[#allocation8 + $0x30] ss:$8 sps:$4 sm:$0xff]   ;;  %v2150_v17 = vld [vmem:[#allocation8 + $0x44] ss:$8 sps:$4 sm:$0xff]  }
  0xc6   : > { %v2149_v16 = vld [vmem:[#allocation9 + $0x30] ss:$8 sps:$4 sm:$0xff]   ;;  %v2152_v18 = vld [vmem:[#allocation9 + $0x44] ss:$8 sps:$4 sm:$0xff]   ;;  %v2154_v19 = vld [vmem:[#allocation8 + $0x40] ss:$8 sps:$4 sm:$0xff]  }
  0xc7   : > { %642 = vmatpush1.bf16.msra.mxu0 %v2136_v7  ;;  %959 = vmatpush1.bf16.msra.mxu1 %v2137_v8  ;;  %v2155_v20 = vld [vmem:[#allocation9 + $0x40] ss:$8 sps:$4 sm:$0xff]   ;;  %v2156_v21 = vld [vmem:[#allocation8 + $0x54] ss:$8 sps:$4 sm:$0xff]   ;;  %v2160_v23 = vld [vmem:[#allocation8 + $0x50] ss:$8 sps:$4 sm:$0xff]  }
  0xc8   : > { %643 = vmatprep.subr.bf16.mxu0 %v2138_v9  ;;  %960 = vmatprep.subr.bf16.mxu1 %v2140_v10  ;;  %v2158_v22 = vld [vmem:[#allocation9 + $0x54] ss:$8 sps:$4 sm:$0xff]   ;;  %v2161_v24 = vld [vmem:[#allocation9 + $0x50] ss:$8 sps:$4 sm:$0xff]   ;;  %v2162_v25 = vld [vmem:[#allocation8 + $0x64] ss:$8 sps:$4 sm:$0xff]  }
  0xc9   : > { %v2164_v26 = vld [vmem:[#allocation9 + $0x64] ss:$8 sps:$4 sm:$0xff]   ;;  %v2166_v27 = vld [vmem:[#allocation8 + $0x60] ss:$8 sps:$4 sm:$0xff]   ;;  %v2168_v29 = vld [vmem:[#allocation8 + $0x74] ss:$8 sps:$4 sm:$0xff]  }
  0xca   : > { %v2167_v28 = vld [vmem:[#allocation9 + $0x60] ss:$8 sps:$4 sm:$0xff]   ;;  %v2170_v30 = vld [vmem:[#allocation9 + $0x74] ss:$8 sps:$4 sm:$0xff]   ;;  %v2172_v31 = vld [vmem:[#allocation8 + $0x70] ss:$8 sps:$4 sm:$0xff]  }
  0xcb   : > { %644 = vmatpush1.bf16.msra.mxu0 %v2142_v11  ;;  %961 = vmatpush1.bf16.msra.mxu1 %v2143_v12  ;;  %v2173_v32 = vld [vmem:[#allocation9 + $0x70] ss:$8 sps:$4 sm:$0xff]   ;;  %v2174_v33 = vld [vmem:[%s2761_s21] sm:$0xff]   ;;  %v2176_v35 = vld [vmem:[%s2761_s21 + $0x8] sm:$0xff]   ;;  %s466_s24 = sld [smem:[#allocation2]]  ;;  %s1819_s29 = sshll.u32 %s2757_s12, 7 }
  0xcc   : > { %645 = vmatprep.subr.bf16.mxu0 %v2144_v13  ;;  %962 = vmatprep.subr.bf16.mxu1 %v2146_v14  ;;  %v2175_v34 = vld [vmem:[%s2768_s23] sm:$0xff]   ;;  %v2177_v36 = vld [vmem:[%s2768_s23 + $0x8] sm:$0xff]   ;;  %v2179_v45 = vld [vmem:[%s2768_s23 + $0x10] sm:$0xff]   ;;  %s2946_s28 = scalar_lea.vmem [#allocation12], %s1819_s29  ;;  %s1908_s30 = sshll.u32 %s2538_s0, 11 }
  0xcd   : > { %v2190_v37 = vld [vmem:[#allocation11 + $0x40] sm:$0xff]   ;;  %v2194_v41 = vld [vmem:[#allocation11 + $0x48] sm:$0xff]   ;;  %v2198_v47 = vld [vmem:[#allocation11 + $0x50] sm:$0xff]   ;;  %s1677_s1 = sshll.u32 %s2946_s28, 4  ;;  %s1664_s22 = scalar_lea.sflag [#allocation5], %s2757_s12  ;;  %s2997_s1 = int_to_ptr.vmem [resolvable:$true] %s1677_s1 }
  0xce   : > { %v2191_v38 = vld [vmem:[#allocation11] sm:$0xff]   ;;  %v2195_v42 = vld [vmem:[#allocation11 + $0x8] sm:$0xff]   ;;  %v2199_v48 = vld [vmem:[#allocation11 + $0x10] sm:$0xff]   ;;  %s2366_s0 = scalar_lea.vmem %s2997_s1, 2048 }
  0xcf   : > { %646 = vmatpush1.bf16.msra.mxu0 %v2148_v15  ;;  %963 = vmatpush1.bf16.msra.mxu1 %v2149_v16  ;;  %v2192_v39 = vld [vmem:[#allocation11 + $0xc0] sm:$0xff]   ;;  %v2196_v43 = vld [vmem:[#allocation11 + $0xc8] sm:$0xff]   ;;  %v2200_v49 = vld [vmem:[#allocation11 + $0xd0] sm:$0xff]   ;;  %p2367_p1 = scmp.ne.s32.totalorder %s2997_s1, %s2366_s0 }
  0xd0   : > { %647 = vmatprep.subr.bf16.mxu0 %v2150_v17  ;;  %964 = vmatprep.subr.bf16.mxu1 %v2152_v18  ;;  %v2193_v40 = vld [vmem:[#allocation11 + $0x80] sm:$0xff]   ;;  %v2197_v46 = vld [vmem:[#allocation11 + $0x88] sm:$0xff]   ;;  %v2201_v50 = vld [vmem:[#allocation11 + $0x90] sm:$0xff]   ;;  %v501_v18 = vlaneseq }
  0xd1   : > { %v2202_v51 = vld [vmem:[#allocation11 + $0x58] sm:$0xff]   ;;  %v2206_v57 = vld [vmem:[#allocation11 + $0x60] sm:$0xff]   ;;  %v2210_v61 = vld [vmem:[#allocation11 + $0x68] sm:$0xff]   ;;  %p2368_p4 = pnand %p2367_p1, %p2665_p5 }
  0xd2   : > { %v2203_v52 = vld [vmem:[#allocation11 + $0x18] sm:$0xff]   ;;  %v2207_v58 = vld [vmem:[#allocation11 + $0x20] sm:$0xff]   ;;  %v2211_v62 = vld [vmem:[#allocation11 + $0x28] sm:$0xff]  }
  0xd3   : > { %648 = vmatpush1.bf16.msra.mxu0 %v2154_v19  ;;  %965 = vmatpush1.bf16.msra.mxu1 %v2155_v20  ;;  %v2204_v53 = vld [vmem:[#allocation11 + $0xd8] sm:$0xff]   ;;  %v2208_v59 = vld [vmem:[#allocation11 + $0xe0] sm:$0xff]   ;;  %v2212_v63 = vld [vmem:[#allocation11 + $0xe8] sm:$0xff]   ;;  %v502_v19 = vshrl.u32 %v501_v18, 7  ;;  %p2369_p0 = pneg %p2368_p4 }
  0xd4   : > { %649 = vmatprep.subr.bf16.mxu0 %v2156_v21  ;;  %966 = vmatprep.subr.bf16.mxu1 %v2158_v22  ;;  %v2180_v54 = vld [vmem:[%s2761_s21 + $0x18] sm:$0xff]   ;;  %v2209_v60 = vld [vmem:[#allocation11 + $0xa0] sm:$0xff]   ;;  %v2213_v3 = vld [vmem:[#allocation11 + $0xa8] sm:$0xff]  }
  0xd5   : > { %v2181_v55 = vld [vmem:[%s2768_s23 + $0x18] sm:$0xff]   ;;  %v2182_v1 = vld [vmem:[%s2761_s21 + $0x20] sm:$0xff]   ;;  %v2214_v4 = vld [vmem:[#allocation11 + $0x70] sm:$0xff]   ;;  %v2814_v20 = vsub.s32 0, %v502_v19  ;;  %v507_v22 = vsub.s32 1, %v502_v19 }
  0xd6   : > { %v2205_v56 = vld [vmem:[#allocation11 + $0x98] sm:$0xff]   ;;  %v2183_v2 = vld [vmem:[%s2768_s23 + $0x20] sm:$0xff]   ;;  %v2215_v5 = vld [vmem:[#allocation11 + $0x30] sm:$0xff]  }
  0xd7   : > { %650 = vmatpush1.bf16.msra.mxu0 %v2160_v23  ;;  %967 = vmatpush1.bf16.msra.mxu1 %v2161_v24  ;;  %v2216_v6 = vld [vmem:[#allocation11 + $0xf0] sm:$0xff]   ;;  %v2184_v8 = vld [vmem:[%s2761_s21 + $0x28] sm:$0xff]   ;;  %v2188_v12 = vld [vmem:[%s2761_s21 + $0x38] sm:$0xff]  }
  0xd8   : > { %651 = vmatprep.subr.bf16.mxu0 %v2162_v25  ;;  %968 = vmatprep.subr.bf16.mxu1 %v2164_v26  ;;  %v2217_v7 = vld [vmem:[#allocation11 + $0xb0] sm:$0xff]   ;;  %v2185_v9 = vld [vmem:[%s2768_s23 + $0x28] sm:$0xff]   ;;  %v2189_v13 = vld [vmem:[%s2768_s23 + $0x38] sm:$0xff]  }
  0xd9   : > { %v2186_v10 = vld [vmem:[%s2761_s21 + $0x30] sm:$0xff]   ;;  %v2218_v14 = vld [vmem:[#allocation11 + $0x78] sm:$0xff]   ;;  %v816_v21 = vld [vmem:[%s3050_s6] sm:$0x3]  ;;  %s3093_s21 = sld [smem:[#allocation25_spill]] }
  0xda   : > { %v2187_v11 = vld [vmem:[%s2768_s23 + $0x30] sm:$0xff]   ;;  %v2219_v15 = vld [vmem:[#allocation11 + $0x38] sm:$0xff]   ;;  %v2826_v24 = vrot.slane %v816_v21, %v2814_v20  ;;  %v2830_v26 = vrot.slane %v816_v21, %v507_v22  ;;  %s2456_s23 = smov [#allocation12]  }
  0xdb   : > { %652 = vmatpush1.bf16.msra.mxu0 %v2166_v27  ;;  %969 = vmatpush1.bf16.msra.mxu1 %v2167_v28  ;;  %v2220_v16 = vld [vmem:[#allocation11 + $0xf8] sm:$0xff]   ;;  %s2370_s20 = sshll.u32 %s2456_s23, 4  ;;  %s2371_s20 = int_to_ptr.vmem [resolvable:$false] %s2370_s20 }
  0xdc   : > { %653 = vmatprep.subr.bf16.mxu0 %v2168_v29  ;;  %970 = vmatprep.subr.bf16.mxu1 %v2170_v30  ;;  %v2221_v17 = vld [vmem:[#allocation11 + $0xb8] sm:$0xff]   ;;  %s2372_s3 = scalar_lea.vmem %s2371_s20, 4096  ;;  %p2373_p8 = scmp.lt.s32.totalorder %s2997_s1, %s2371_s20 }
  0xdd   : > { %p2374_p6 = scmp.lt.s32.totalorder %s2372_s3, %s2366_s0 }
  0xdf   : > { %654 = vmatpush1.bf16.msra.mxu0 %v2172_v31  ;;  %971 = vmatpush1.bf16.msra.mxu1 %v2173_v32  ;;  %s2995_s11 = scalar_lea.hbm %s3093_s21, %s1908_s30  ;;  %p2375_p10 = por %p2374_p6, %p2373_p8 }
  0xe0   : > { %1909 = vmatprep.subr.bf16.mxu0 %v2190_v37  ;;  %1973 = vmatprep.subr.bf16.mxu1 %v2192_v39 }
  0xe1   : > { %p2376_p3 = pnand %p2375_p10, %p2369_p0 }
  0xe2   : > { %672 = vmatmul.mubr.bf16.vlgmr.msra.gmra.mrb[0].mxu0 %v2174_v33  ;;  %989 = vmatmul.mubr.bf16.vlgmr.msra.gmra.mrb[0].mxu1 %v2175_v34 }
  0xe3   : > { %681 = vmatprep.mubr.bf16.mxu0 %v2455_v0  ;;  %998 = vmatprep.mubr.bf16.mxu1 %v2455_v0 }
  0xe4   : > { %1910 = vmatpush3.bf16.msra.mxu0 %v2191_v38  ;;  %1974 = vmatpush3.bf16.msra.mxu1 %v2193_v40 }
  0xe5   : > { %1911 = vmatprep.subr.bf16.mxu0 %v2194_v41  ;;  %1975 = vmatprep.subr.bf16.mxu1 %v2196_v43 }
  0xe8   : > { %1912 = vmatpush3.bf16.msra.mxu0 %v2195_v42  ;;  %1976 = vmatpush3.bf16.msra.mxu1 %v2197_v46  ;;  %v2838_v42 = vstv %s466_s24 }
  0xe9   : > { %1913 = vmatprep.subr.bf16.mxu0 %v2198_v47  ;;  %1977 = vmatprep.subr.bf16.mxu1 %v2200_v49 }
  0xea   : > { %682 = vmatmul.mubr.bf16.gmra.mrb[4].mxu0 %v2176_v35  ;;  %999 = vmatmul.mubr.bf16.gmra.mrb[4].mxu1 %v2177_v36 }
  0xeb   : > { %691 = vmatprep.mubr.bf16.mxu0 %v2455_v0  ;;  %1008 = vmatprep.mubr.bf16.mxu1 %v2455_v0 }
  0xec   : > { %1914 = vmatpush3.bf16.msra.mxu0 %v2199_v48  ;;  %1978 = vmatpush3.bf16.msra.mxu1 %v2201_v50 }
  0xed   : > { %1915 = vmatprep.subr.bf16.mxu0 %v2202_v51  ;;  %1979 = vmatprep.subr.bf16.mxu1 %v2204_v53 }
  0xf0   : > { %1916 = vmatpush3.bf16.msra.mxu0 %v2203_v52  ;;  %1980 = vmatpush3.bf16.msra.mxu1 %v2205_v56 }
  0xf1   : > { %1917 = vmatprep.subr.bf16.mxu0 %v2206_v57  ;;  %1981 = vmatprep.subr.bf16.mxu1 %v2208_v59 }
  0xf2   : > { %692 = vmatmul.mubr.bf16.gmra.mrb[8].mxu0 %v2178_v44  ;;  %1009 = vmatmul.mubr.bf16.gmra.mrb[8].mxu1 %v2179_v45 }
  0xf3   : > { %701 = vmatprep.mubr.bf16.mxu0 %v2455_v0  ;;  %1018 = vmatprep.mubr.bf16.mxu1 %v2455_v0 }
  0xf4   : > { %1918 = vmatpush3.bf16.msra.mxu0 %v2207_v58  ;;  %1982 = vmatpush3.bf16.msra.mxu1 %v2209_v60 }
  0xf5   : > { %1919 = vmatprep.subr.bf16.mxu0 %v2210_v61  ;;  %1983 = vmatprep.subr.bf16.mxu1 %v2212_v63 }
  0xf8   : > { %1920 = vmatpush3.bf16.msra.mxu0 %v2211_v62  ;;  %1984 = vmatpush3.bf16.msra.mxu1 %v2213_v3 }
  0xf9   : > { %1921 = vmatprep.subr.bf16.mxu0 %v2214_v4  ;;  %1985 = vmatprep.subr.bf16.mxu1 %v2216_v6 }
  0xfa   : > { %702 = vmatmul.mubr.bf16.gmra.mrb[12].mxu0 %v2180_v54  ;;  %1019 = vmatmul.mubr.bf16.gmra.mrb[12].mxu1 %v2181_v55 }
  0xfb   : > { %711 = vmatprep.mubr.bf16.mxu0 %v2455_v0  ;;  %1028 = vmatprep.mubr.bf16.mxu1 %v2455_v0 }
  0xfc   : > { %1922 = vmatpush3.bf16.msra.mxu0 %v2215_v5  ;;  %1986 = vmatpush3.bf16.msra.mxu1 %v2217_v7 }
  0xfd   : > { %1923 = vmatprep.subr.bf16.mxu0 %v2218_v14  ;;  %1987 = vmatprep.subr.bf16.mxu1 %v2220_v16 }
 0x100   : > { %1924 = vmatpush3.bf16.msra.mxu0 %v2219_v15  ;;  %1988 = vmatpush3.bf16.msra.mxu1 %v2221_v17 }
 0x102   : > { %712 = vmatmul.mubr.bf16.gmra.mrb[16].mxu0 %v2182_v1  ;;  %1029 = vmatmul.mubr.bf16.gmra.mrb[16].mxu1 %v2183_v2 }
 0x103   : > { %721 = vmatprep.mubr.bf16.mxu0 %v2455_v0  ;;  %1038 = vmatprep.mubr.bf16.mxu1 %v2455_v0 }
 0x10a   : > { %722 = vmatmul.mubr.bf16.gmra.mrb[20].mxu0 %v2184_v8  ;;  %1039 = vmatmul.mubr.bf16.gmra.mrb[20].mxu1 %v2185_v9 }
 0x10b   : > { %731 = vmatprep.mubr.bf16.mxu0 %v2455_v0  ;;  %1048 = vmatprep.mubr.bf16.mxu1 %v2455_v0 }
 0x112   : > { %732 = vmatmul.mubr.bf16.gmra.mrb[24].mxu0 %v2186_v10  ;;  %1049 = vmatmul.mubr.bf16.gmra.mrb[24].mxu1 %v2187_v11 }
 0x113   : > { %741 = vmatprep.mubr.bf16.mxu0 %v2455_v0  ;;  %1058 = vmatprep.mubr.bf16.mxu1 %v2455_v0  ;;  %v499_v0 = vld [vmem:[%s3048_s4] sm:$0x3] }
 0x114   : > { %v2823_v23 = vrot.slane %v499_v0, %v2814_v20  ;;  %v2828_v25 = vrot.slane %v499_v0, %v507_v22 }
 0x11a   : > { %742 = vmatmul.mubr.bf16.gmra.mrb[28].mxu0 %v2188_v12  ;;  %1059 = vmatmul.mubr.bf16.gmra.mrb[28].mxu1 %v2189_v13 }
 0x1b5   : > { %v673_v27 = vpop.f32.mrb[0].mxu0  ;;  %v990_v28 = vpop.f32.mrb[0].mxu1 }
 0x1b6   : > { %v674_v29 = vadd.f32 %v673_v27, %v2823_v23  ;;  %v991_v30 = vadd.f32 %v990_v28, %v2826_v24  ;;  %v675_v31 = vpop.f32.mrb[1].mxu0  ;;  %v992_v32 = vpop.f32.mrb[1].mxu1 }
 0x1b7   : > { %v676_v33 = vadd.f32 %v675_v31, %v2828_v25  ;;  %v993_v34 = vadd.f32 %v992_v32, %v2830_v26  ;;  %v677_v35 = vpop.f32.mrb[2].mxu0  ;;  %v994_v36 = vpop.f32.mrb[2].mxu1 }
 0x1b8   : > { %v752_v37 = vmax.f32 %v674_v29, 0.0  ;;  %v678_v38 = vadd.f32 %v677_v35, %v2823_v23  ;;  %v995_v39 = vadd.f32 %v994_v36, %v2826_v24  ;;  %v679_v40 = vpop.f32.mrb[3].mxu0  ;;  %v996_v41 = vpop.f32.mrb[3].mxu1  ;;  %v1069_v46 = vmax.f32 %v991_v30, 0.0 }
 0x1b9   : > { %v753_v43 = vmax.f32 %v676_v33, 0.0  ;;  %v680_v44 = vadd.f32 %v679_v40, %v2828_v25  ;;  %v997_v45 = vadd.f32 %v996_v41, %v2830_v26  ;;  %v1070_v49 = vmax.f32 %v993_v34, 0.0 }
 0x1ba   : > { %v754_v47 = vmax.f32 %v678_v38, 0.0  ;;  %v1071_v48 = vmax.f32 %v995_v39, 0.0  ;;  %v1118_v52 = vmul.f32 %v2838_v42, %v752_v37 }
 0x1bb   : > { %v755_v50 = vmax.f32 %v680_v44, 0.0  ;;  %v1072_v51 = vmax.f32 %v997_v45, 0.0  ;;  %v1119_v55 = vmul.f32 %v2838_v42, %v753_v43 }
 0x1bc   : > { %v1120_v53 = vmul.f32 %v2838_v42, %v754_v47  ;;  %v1101_v54 = vpack.c.bf16 %v1071_v48, %v1069_v46 }
 0x1bd   : > { %v1121_v56 = vmul.f32 %v2838_v42, %v755_v50  ;;  %v1102_v57 = vpack.c.bf16 %v1072_v51, %v1070_v49  ;;  %v683_v58 = vpop.f32.mrb[4].mxu0  ;;  %v1000_v59 = vpop.f32.mrb[4].mxu1 }
 0x1be   : > { %v1150_v60 = vpack.c.bf16 %v1120_v53, %v1118_v52  ;;  %v684_v61 = vadd.f32 %v683_v58, %v2823_v23  ;;  %v1001_v62 = vadd.f32 %v1000_v59, %v2826_v24  ;;  %v685_v63 = vpop.f32.mrb[5].mxu0  ;;  %v1002_v1 = vpop.f32.mrb[5].mxu1 }
 0x1bf   : > { %v686_v2 = vadd.f32 %v685_v63, %v2828_v25  ;;  %v1003_v3 = vadd.f32 %v1002_v1, %v2830_v26  ;;  %v687_v4 = vpop.f32.mrb[6].mxu0  ;;  %v1004_v5 = vpop.f32.mrb[6].mxu1  ;;  %1461 = vmatprep.mubr.bf16.mxu0 %v1102_v57  ;;  %v1151_v6 = vpack.c.bf16 %v1121_v56, %v1119_v55 }
 0x1c0   : > { %v756_v7 = vmax.f32 %v684_v61, 0.0  ;;  %v688_v8 = vadd.f32 %v687_v4, %v2823_v23  ;;  %v1005_v9 = vadd.f32 %v1004_v5, %v2826_v24  ;;  %v689_v10 = vpop.f32.mrb[7].mxu0  ;;  %v1006_v11 = vpop.f32.mrb[7].mxu1  ;;  %1462 = vmatmul.mubr.bf16.vlgmr.msra.gmra.mrb[32].mxu0 %v1101_v54  ;;  %v1073_v15 = vmax.f32 %v1001_v62, 0.0 }
 0x1c1   : > { %v757_v12 = vmax.f32 %v686_v2, 0.0  ;;  %v690_v13 = vadd.f32 %v689_v10, %v2828_v25  ;;  %v1007_v14 = vadd.f32 %v1006_v11, %v2830_v26  ;;  %1558 = vmatprep.mubr.bf16.mxu1 %v1151_v6  ;;  %v1074_v18 = vmax.f32 %v1003_v3, 0.0 }
 0x1c2   : > { %v758_v16 = vmax.f32 %v688_v8, 0.0  ;;  %v1075_v17 = vmax.f32 %v1005_v9, 0.0  ;;  %1559 = vmatmul.mubr.bf16.vlgmr.msra.gmra.mrb[32].mxu1 %v1150_v60  ;;  %v1122_v21 = vmul.f32 %v2838_v42, %v756_v7 }
 0x1c3   : > { %v759_v19 = vmax.f32 %v690_v13, 0.0  ;;  %v1076_v0 = vmax.f32 %v1007_v14, 0.0  ;;  %v1123_v28 = vmul.f32 %v2838_v42, %v757_v12 }
 0x1c4   : > { %v1124_v22 = vmul.f32 %v2838_v42, %v758_v16  ;;  %v1103_v27 = vpack.c.bf16 %v1075_v17, %v1073_v15 }
 0x1c5   : > { %v1125_v29 = vmul.f32 %v2838_v42, %v759_v19  ;;  %v1104_v30 = vpack.c.bf16 %v1076_v0, %v1074_v18  ;;  %v693_v31 = vpop.f32.mrb[8].mxu0  ;;  %v1010_v32 = vpop.f32.mrb[8].mxu1 }
 0x1c6   : > { %v694_v33 = vadd.f32 %v693_v31, %v2823_v23  ;;  %v1011_v34 = vadd.f32 %v1010_v32, %v2826_v24  ;;  %v695_v35 = vpop.f32.mrb[9].mxu0  ;;  %v1012_v36 = vpop.f32.mrb[9].mxu1  ;;  %v1152_v37 = vpack.c.bf16 %v1124_v22, %v1122_v21 }
 0x1c7   : > { %v696_v38 = vadd.f32 %v695_v35, %v2828_v25  ;;  %v1013_v39 = vadd.f32 %v1012_v36, %v2830_v26  ;;  %v697_v40 = vpop.f32.mrb[10].mxu0  ;;  %v1014_v41 = vpop.f32.mrb[10].mxu1  ;;  %1469 = vmatprep.mubr.bf16.mxu0 %v1104_v30  ;;  %v1153_v43 = vpack.c.bf16 %v1125_v29, %v1123_v28 }
 0x1c8   : > { %v760_v44 = vmax.f32 %v694_v33, 0.0  ;;  %v698_v45 = vadd.f32 %v697_v40, %v2823_v23  ;;  %v1015_v46 = vadd.f32 %v1014_v41, %v2826_v24  ;;  %v699_v47 = vpop.f32.mrb[11].mxu0  ;;  %v1016_v48 = vpop.f32.mrb[11].mxu1  ;;  %1470 = vmatmul.mubr.bf16.gmra.mrb[36].mxu0 %v1103_v27  ;;  %v1077_v52 = vmax.f32 %v1011_v34, 0.0 }
 0x1c9   : > { %v761_v49 = vmax.f32 %v696_v38, 0.0  ;;  %v700_v50 = vadd.f32 %v699_v47, %v2828_v25  ;;  %v1017_v51 = vadd.f32 %v1016_v48, %v2830_v26  ;;  %1566 = vmatprep.mubr.bf16.mxu1 %v1153_v43  ;;  %v1078_v55 = vmax.f32 %v1013_v39, 0.0 }
 0x1ca   : > { %v762_v53 = vmax.f32 %v698_v45, 0.0  ;;  %v1079_v54 = vmax.f32 %v1015_v46, 0.0  ;;  %1567 = vmatmul.mubr.bf16.gmra.mrb[36].mxu1 %v1152_v37  ;;  %v1126_v58 = vmul.f32 %v2838_v42, %v760_v44 }
 0x1cb   : > { %v763_v56 = vmax.f32 %v700_v50, 0.0  ;;  %v1080_v57 = vmax.f32 %v1017_v51, 0.0  ;;  %v1127_v61 = vmul.f32 %v2838_v42, %v761_v49 }
 0x1cc   : > { %v1128_v59 = vmul.f32 %v2838_v42, %v762_v53  ;;  %v1105_v60 = vpack.c.bf16 %v1079_v54, %v1077_v52 }
 0x1cd   : > { %v1129_v62 = vmul.f32 %v2838_v42, %v763_v56  ;;  %v1106_v63 = vpack.c.bf16 %v1080_v57, %v1078_v55  ;;  %v703_v1 = vpop.f32.mrb[12].mxu0  ;;  %v1020_v2 = vpop.f32.mrb[12].mxu1 }
 0x1ce   : > { %v704_v3 = vadd.f32 %v703_v1, %v2823_v23  ;;  %v1021_v4 = vadd.f32 %v1020_v2, %v2826_v24  ;;  %v705_v5 = vpop.f32.mrb[13].mxu0  ;;  %v1022_v6 = vpop.f32.mrb[13].mxu1  ;;  %v1154_v7 = vpack.c.bf16 %v1128_v59, %v1126_v58 }
 0x1cf   : > { %v706_v8 = vadd.f32 %v705_v5, %v2828_v25  ;;  %v1023_v9 = vadd.f32 %v1022_v6, %v2830_v26  ;;  %v707_v10 = vpop.f32.mrb[14].mxu0  ;;  %v1024_v11 = vpop.f32.mrb[14].mxu1  ;;  %1477 = vmatprep.mubr.bf16.mxu0 %v1106_v63  ;;  %v1155_v12 = vpack.c.bf16 %v1129_v62, %v1127_v61 }
 0x1d0   : > { %v764_v13 = vmax.f32 %v704_v3, 0.0  ;;  %v708_v14 = vadd.f32 %v707_v10, %v2823_v23  ;;  %v1025_v15 = vadd.f32 %v1024_v11, %v2826_v24  ;;  %v709_v16 = vpop.f32.mrb[15].mxu0  ;;  %v1026_v17 = vpop.f32.mrb[15].mxu1  ;;  %1478 = vmatmul.mubr.bf16.gmra.mrb[40].mxu0 %v1105_v60  ;;  %v1081_v21 = vmax.f32 %v1021_v4, 0.0 }
 0x1d1   : > { %v765_v18 = vmax.f32 %v706_v8, 0.0  ;;  %v710_v19 = vadd.f32 %v709_v16, %v2828_v25  ;;  %v1027_v0 = vadd.f32 %v1026_v17, %v2830_v26  ;;  %1574 = vmatprep.mubr.bf16.mxu1 %v1155_v12  ;;  %v1082_v28 = vmax.f32 %v1023_v9, 0.0 }
 0x1d2   : > { %v766_v22 = vmax.f32 %v708_v14, 0.0  ;;  %v1083_v27 = vmax.f32 %v1025_v15, 0.0  ;;  %1575 = vmatmul.mubr.bf16.gmra.mrb[40].mxu1 %v1154_v7  ;;  %v1130_v31 = vmul.f32 %v2838_v42, %v764_v13 }
 0x1d3   : > { %v767_v29 = vmax.f32 %v710_v19, 0.0  ;;  %v1084_v30 = vmax.f32 %v1027_v0, 0.0  ;;  %v1131_v34 = vmul.f32 %v2838_v42, %v765_v18 }
 0x1d4   : > { %v1132_v32 = vmul.f32 %v2838_v42, %v766_v22  ;;  %v1107_v33 = vpack.c.bf16 %v1083_v27, %v1081_v21 }
 0x1d5   : > { %v1133_v35 = vmul.f32 %v2838_v42, %v767_v29  ;;  %v1108_v36 = vpack.c.bf16 %v1084_v30, %v1082_v28  ;;  %v713_v37 = vpop.f32.mrb[16].mxu0  ;;  %v1030_v38 = vpop.f32.mrb[16].mxu1 }
 0x1d6   : > { %v714_v39 = vadd.f32 %v713_v37, %v2823_v23  ;;  %v1031_v40 = vadd.f32 %v1030_v38, %v2826_v24  ;;  %v715_v41 = vpop.f32.mrb[17].mxu0  ;;  %v1032_v43 = vpop.f32.mrb[17].mxu1  ;;  %v1156_v44 = vpack.c.bf16 %v1132_v32, %v1130_v31 }
 0x1d7   : > { %v716_v45 = vadd.f32 %v715_v41, %v2828_v25  ;;  %v1033_v46 = vadd.f32 %v1032_v43, %v2830_v26  ;;  %v717_v47 = vpop.f32.mrb[18].mxu0  ;;  %v1034_v48 = vpop.f32.mrb[18].mxu1  ;;  %1485 = vmatprep.mubr.bf16.mxu0 %v1108_v36  ;;  %v1157_v49 = vpack.c.bf16 %v1133_v35, %v1131_v34 }
 0x1d8   : > { %v768_v50 = vmax.f32 %v714_v39, 0.0  ;;  %v718_v51 = vadd.f32 %v717_v47, %v2823_v23  ;;  %v1035_v52 = vadd.f32 %v1034_v48, %v2826_v24  ;;  %v719_v53 = vpop.f32.mrb[19].mxu0  ;;  %v1036_v54 = vpop.f32.mrb[19].mxu1  ;;  %1486 = vmatmul.mubr.bf16.gmra.mrb[44].mxu0 %v1107_v33  ;;  %v1085_v58 = vmax.f32 %v1031_v40, 0.0 }
 0x1d9   : > { %v769_v55 = vmax.f32 %v716_v45, 0.0  ;;  %v720_v56 = vadd.f32 %v719_v53, %v2828_v25  ;;  %v1037_v57 = vadd.f32 %v1036_v54, %v2830_v26  ;;  %1582 = vmatprep.mubr.bf16.mxu1 %v1157_v49  ;;  %v1086_v61 = vmax.f32 %v1033_v46, 0.0 }
 0x1da   : > { %v770_v59 = vmax.f32 %v718_v51, 0.0  ;;  %v1087_v60 = vmax.f32 %v1035_v52, 0.0  ;;  %1583 = vmatmul.mubr.bf16.gmra.mrb[44].mxu1 %v1156_v44  ;;  %v1134_v1 = vmul.f32 %v2838_v42, %v768_v50 }
 0x1db   : > { %v771_v62 = vmax.f32 %v720_v56, 0.0  ;;  %v1088_v63 = vmax.f32 %v1037_v57, 0.0  ;;  %v1135_v4 = vmul.f32 %v2838_v42, %v769_v55 }
 0x1dc   : > { %v1136_v2 = vmul.f32 %v2838_v42, %v770_v59  ;;  %v1109_v3 = vpack.c.bf16 %v1087_v60, %v1085_v58 }
 0x1dd   : > { %v1137_v5 = vmul.f32 %v2838_v42, %v771_v62  ;;  %v1110_v6 = vpack.c.bf16 %v1088_v63, %v1086_v61  ;;  %v723_v7 = vpop.f32.mrb[20].mxu0  ;;  %v1040_v8 = vpop.f32.mrb[20].mxu1 }
 0x1de   : > { %v724_v9 = vadd.f32 %v723_v7, %v2823_v23  ;;  %v1041_v10 = vadd.f32 %v1040_v8, %v2826_v24  ;;  %v725_v11 = vpop.f32.mrb[21].mxu0  ;;  %v1042_v12 = vpop.f32.mrb[21].mxu1  ;;  %v1158_v13 = vpack.c.bf16 %v1136_v2, %v1134_v1 }
 0x1df   : > { %v726_v14 = vadd.f32 %v725_v11, %v2828_v25  ;;  %v1043_v15 = vadd.f32 %v1042_v12, %v2830_v26  ;;  %v727_v16 = vpop.f32.mrb[22].mxu0  ;;  %v1044_v17 = vpop.f32.mrb[22].mxu1  ;;  %1493 = vmatprep.mubr.bf16.mxu0 %v1110_v6  ;;  %v1159_v18 = vpack.c.bf16 %v1137_v5, %v1135_v4 }
 0x1e0   : > { %v772_v19 = vmax.f32 %v724_v9, 0.0  ;;  %v728_v0 = vadd.f32 %v727_v16, %v2823_v23  ;;  %v1045_v21 = vadd.f32 %v1044_v17, %v2826_v24  ;;  %v729_v22 = vpop.f32.mrb[23].mxu0  ;;  %v1046_v27 = vpop.f32.mrb[23].mxu1  ;;  %1494 = vmatmul.mubr.bf16.gmra.mrb[48].mxu0 %v1109_v3  ;;  %v1089_v31 = vmax.f32 %v1041_v10, 0.0 }
 0x1e1   : > { %v773_v28 = vmax.f32 %v726_v14, 0.0  ;;  %v730_v29 = vadd.f32 %v729_v22, %v2828_v25  ;;  %v1047_v30 = vadd.f32 %v1046_v27, %v2830_v26  ;;  %1590 = vmatprep.mubr.bf16.mxu1 %v1159_v18  ;;  %v1090_v34 = vmax.f32 %v1043_v15, 0.0 }
 0x1e2   : > { %v774_v32 = vmax.f32 %v728_v0, 0.0  ;;  %v1091_v33 = vmax.f32 %v1045_v21, 0.0  ;;  %1591 = vmatmul.mubr.bf16.gmra.mrb[48].mxu1 %v1158_v13  ;;  %v1138_v37 = vmul.f32 %v2838_v42, %v772_v19 }
 0x1e3   : > { %v775_v35 = vmax.f32 %v730_v29, 0.0  ;;  %v1092_v36 = vmax.f32 %v1047_v30, 0.0  ;;  %v1139_v40 = vmul.f32 %v2838_v42, %v773_v28 }
 0x1e4   : > { %v1140_v38 = vmul.f32 %v2838_v42, %v774_v32  ;;  %v1111_v39 = vpack.c.bf16 %v1091_v33, %v1089_v31 }
 0x1e5   : > { %v1141_v41 = vmul.f32 %v2838_v42, %v775_v35  ;;  %v1112_v43 = vpack.c.bf16 %v1092_v36, %v1090_v34  ;;  %v733_v44 = vpop.f32.mrb[24].mxu0  ;;  %v1050_v45 = vpop.f32.mrb[24].mxu1 }
 0x1e6   : > { %v734_v46 = vadd.f32 %v733_v44, %v2823_v23  ;;  %v1051_v47 = vadd.f32 %v1050_v45, %v2826_v24  ;;  %v735_v48 = vpop.f32.mrb[25].mxu0  ;;  %v1052_v49 = vpop.f32.mrb[25].mxu1  ;;  %v1160_v50 = vpack.c.bf16 %v1140_v38, %v1138_v37 }
 0x1e7   : > { %v736_v51 = vadd.f32 %v735_v48, %v2828_v25  ;;  %v1053_v52 = vadd.f32 %v1052_v49, %v2830_v26  ;;  %v737_v53 = vpop.f32.mrb[26].mxu0  ;;  %v1054_v54 = vpop.f32.mrb[26].mxu1  ;;  %1501 = vmatprep.mubr.bf16.mxu0 %v1112_v43  ;;  %v1161_v55 = vpack.c.bf16 %v1141_v41, %v1139_v40  ;;  %v1623_v48 = vld [vmem:[%s3053_s9] sm:$0x1] }
 0x1e8   : > { %v776_v56 = vmax.f32 %v734_v46, 0.0  ;;  %v738_v57 = vadd.f32 %v737_v53, %v2823_v23  ;;  %v1055_v58 = vadd.f32 %v1054_v54, %v2826_v24  ;;  %v739_v59 = vpop.f32.mrb[27].mxu0  ;;  %v1056_v60 = vpop.f32.mrb[27].mxu1  ;;  %1502 = vmatmul.mubr.bf16.gmra.mrb[52].mxu0 %v1111_v39  ;;  %v1093_v1 = vmax.f32 %v1051_v47, 0.0 }
 0x1e9   : > { %v777_v61 = vmax.f32 %v736_v51, 0.0  ;;  %v740_v62 = vadd.f32 %v739_v59, %v2828_v25  ;;  %v1057_v63 = vadd.f32 %v1056_v60, %v2830_v26  ;;  %1598 = vmatprep.mubr.bf16.mxu1 %v1161_v55  ;;  %v1094_v4 = vmax.f32 %v1053_v52, 0.0  ;;  %v2937_v51 = vld [vmem:[%s3052_s8] ss:$0 sm:$0xff] }
 0x1ea   : > { %v778_v2 = vmax.f32 %v738_v57, 0.0  ;;  %v1095_v3 = vmax.f32 %v1055_v58, 0.0  ;;  %1599 = vmatmul.mubr.bf16.gmra.mrb[52].mxu1 %v1160_v50  ;;  %v1142_v7 = vmul.f32 %v2838_v42, %v776_v56  ;;  %v1624_v50 = vmul.f32 %v1623_v48, %v2838_v42 }
 0x1eb   : > { %v779_v5 = vmax.f32 %v740_v62, 0.0  ;;  %v1096_v6 = vmax.f32 %v1057_v63, 0.0  ;;  %v1143_v10 = vmul.f32 %v2838_v42, %v777_v61 }
 0x1ec   : > { %v1144_v8 = vmul.f32 %v2838_v42, %v778_v2  ;;  %v1113_v9 = vpack.c.bf16 %v1095_v3, %v1093_v1  ;;  %v2942_v61 = vrot.slane %v1624_v50, %v2814_v20 }
 0x1ed   : > { %v1145_v11 = vmul.f32 %v2838_v42, %v779_v5  ;;  %v1114_v12 = vpack.c.bf16 %v1096_v6, %v1094_v4  ;;  %v743_v13 = vpop.f32.mrb[28].mxu0  ;;  %v1060_v14 = vpop.f32.mrb[28].mxu1 }
 0x1ee   : > { %v744_v15 = vadd.f32 %v743_v13, %v2823_v23  ;;  %v1061_v16 = vadd.f32 %v1060_v14, %v2826_v24  ;;  %v745_v17 = vpop.f32.mrb[29].mxu0  ;;  %v1062_v18 = vpop.f32.mrb[29].mxu1  ;;  %v1162_v19 = vpack.c.bf16 %v1144_v8, %v1142_v7 }
 0x1ef   : > { %v746_v0 = vadd.f32 %v745_v17, %v2828_v25  ;;  %v1063_v21 = vadd.f32 %v1062_v18, %v2830_v26  ;;  %v747_v22 = vpop.f32.mrb[30].mxu0  ;;  %v1064_v27 = vpop.f32.mrb[30].mxu1  ;;  %1509 = vmatprep.mubr.bf16.mxu0 %v1114_v12  ;;  %v1163_v28 = vpack.c.bf16 %v1145_v11, %v1143_v10 }
 0x1f0   : > { %v780_v29 = vmax.f32 %v744_v15, 0.0  ;;  %v748_v30 = vadd.f32 %v747_v22, %v2823_v23  ;;  %v1065_v31 = vadd.f32 %v1064_v27, %v2826_v24  ;;  %v749_v32 = vpop.f32.mrb[31].mxu0  ;;  %v1066_v33 = vpop.f32.mrb[31].mxu1  ;;  %1510 = vmatmul.mubr.bf16.gmra.mrb[56].mxu0 %v1113_v9  ;;  %v1097_v37 = vmax.f32 %v1061_v16, 0.0 }
 0x1f1   : > { %v781_v34 = vmax.f32 %v746_v0, 0.0  ;;  %v750_v35 = vadd.f32 %v749_v32, %v2828_v25  ;;  %v1067_v36 = vadd.f32 %v1066_v33, %v2830_v26  ;;  %1606 = vmatprep.mubr.bf16.mxu1 %v1163_v28  ;;  %v1098_v40 = vmax.f32 %v1063_v21, 0.0 }
 0x1f2   : > { %v782_v38 = vmax.f32 %v748_v30, 0.0  ;;  %v1099_v39 = vmax.f32 %v1065_v31, 0.0  ;;  %1607 = vmatmul.mubr.bf16.gmra.mrb[56].mxu1 %v1162_v19  ;;  %v1146_v23 = vmul.f32 %v2838_v42, %v780_v29 }
 0x1f3   : > { %v783_v41 = vmax.f32 %v750_v35, 0.0  ;;  %v1100_v43 = vmax.f32 %v1067_v36, 0.0  ;;  %v1147_v45 = vmul.f32 %v2838_v42, %v781_v34 }
 0x1f4   : > { %v1148_v24 = vmul.f32 %v2838_v42, %v782_v38  ;;  %v1115_v44 = vpack.c.bf16 %v1099_v39, %v1097_v37 }
 0x1f5   : > { %v1149_v46 = vmul.f32 %v2838_v42, %v783_v41  ;;  %v1116_v25 = vpack.c.bf16 %v1100_v43, %v1098_v40 }
 0x1f6   : > { %v1164_v47 = vpack.c.bf16 %v1148_v24, %v1146_v23 }
 0x1f7   : > { %1517 = vmatprep.mubr.bf16.mxu0 %v1116_v25  ;;  %v1165_v26 = vpack.c.bf16 %v1149_v46, %v1147_v45 }
 0x1f8   : > { %1518 = vmatmul.mubr.bf16.gmra.mrb[60].mxu0 %v1115_v44 }
 0x1f9   : > { %1614 = vmatprep.mubr.bf16.mxu1 %v1165_v26 }
 0x1fa   : > { %1615 = vmatmul.mubr.bf16.gmra.mrb[60].mxu1 %v1164_v47 }
 0x293   : > { %v1925_v49 = vpop.f32.mrb[32].mxu0 }
 0x294   : > { %v1926_v52 = vpop.f32.mrb[33].mxu0 }
 0x295   : > { %v1927_v53 = vadd.f32 %v1926_v52, %v1925_v49  ;;  %v1928_v54 = vpop.f32.mrb[34].mxu0  ;;  %v1989_v55 = vpop.f32.mrb[32].mxu1 }
 0x296   : > { %v1929_v56 = vpop.f32.mrb[35].mxu0  ;;  %v1990_v57 = vpop.f32.mrb[33].mxu1 }
 0x297   : > { %v1464_v58 = vadd.f32 %v1927_v53, %v2937_v51  ;;  %v1930_v59 = vadd.f32 %v1929_v56, %v1928_v54  ;;  %v1991_v60 = vadd.f32 %v1990_v57, %v1989_v55  ;;  %v1992_v42 = vpop.f32.mrb[34].mxu1 }
 0x298   : > { %v1993_v62 = vpop.f32.mrb[35].mxu1 }
 0x299   : > { %v1467_v63 = vadd.f32 %v1930_v59, %v2937_v51  ;;  %v1561_v1 = vadd.f32 %v1991_v60, %v1464_v58  ;;  %v1994_v2 = vadd.f32 %v1993_v62, %v1992_v42 }
 0x29b   : > { %v1631_v3 = vadd.f32 %v2942_v61, %v1561_v1  ;;  %v1564_v4 = vadd.f32 %v1994_v2, %v1467_v63  ;;  %v1931_v5 = vpop.f32.mrb[36].mxu0 }
 0x29c   : > { %v1932_v6 = vpop.f32.mrb[37].mxu0 }
 0x29d   : > { %1647 = vst [vmem:[%s2946_s28] sm:$0xff] %v1631_v3  ;;  %v1632_v7 = vadd.f32 %v2942_v61, %v1564_v4  ;;  %v1933_v20 = vadd.f32 %v1932_v6, %v1931_v5  ;;  %v1934_v8 = vpop.f32.mrb[38].mxu0  ;;  %v1995_v9 = vpop.f32.mrb[36].mxu1 }
 0x29e   : > { %v1935_v10 = vpop.f32.mrb[39].mxu0  ;;  %v1996_v11 = vpop.f32.mrb[37].mxu1 }
 0x29f   : > { %1648 = vst [vmem:[%s2946_s28 + $0x8] sm:$0xff] %v1632_v7  ;;  %v1472_v12 = vadd.f32 %v1933_v20, %v2937_v51  ;;  %v1936_v13 = vadd.f32 %v1935_v10, %v1934_v8  ;;  %v1997_v14 = vadd.f32 %v1996_v11, %v1995_v9  ;;  %v1998_v15 = vpop.f32.mrb[38].mxu1 }
 0x2a0   : > { %v1999_v16 = vpop.f32.mrb[39].mxu1 }
 0x2a1   : > { %v1475_v17 = vadd.f32 %v1936_v13, %v2937_v51  ;;  %v1569_v18 = vadd.f32 %v1997_v14, %v1472_v12  ;;  %v2000_v19 = vadd.f32 %v1999_v16, %v1998_v15 }
 0x2a3   : > { %v1633_v0 = vadd.f32 %v2942_v61, %v1569_v18  ;;  %v1572_v21 = vadd.f32 %v2000_v19, %v1475_v17  ;;  %v1937_v22 = vpop.f32.mrb[40].mxu0 }
 0x2a4   : > { %v1938_v27 = vpop.f32.mrb[41].mxu0 }
 0x2a5   : > { %1649 = vst [vmem:[%s2946_s28 + $0x10] sm:$0xff] %v1633_v0  ;;  %v1634_v28 = vadd.f32 %v2942_v61, %v1572_v21  ;;  %v1939_v29 = vadd.f32 %v1938_v27, %v1937_v22  ;;  %v1940_v30 = vpop.f32.mrb[42].mxu0  ;;  %v2001_v31 = vpop.f32.mrb[40].mxu1 }
 0x2a6   : > { %v1941_v32 = vpop.f32.mrb[43].mxu0  ;;  %v2002_v33 = vpop.f32.mrb[41].mxu1 }
 0x2a7   : > { %1650 = vst [vmem:[%s2946_s28 + $0x18] sm:$0xff] %v1634_v28  ;;  %v1480_v34 = vadd.f32 %v1939_v29, %v2937_v51  ;;  %v1942_v35 = vadd.f32 %v1941_v32, %v1940_v30  ;;  %v2003_v36 = vadd.f32 %v2002_v33, %v2001_v31  ;;  %v2004_v37 = vpop.f32.mrb[42].mxu1 }
 0x2a8   : > { %v2005_v38 = vpop.f32.mrb[43].mxu1 }
 0x2a9   : > { %v1483_v39 = vadd.f32 %v1942_v35, %v2937_v51  ;;  %v1577_v40 = vadd.f32 %v2003_v36, %v1480_v34  ;;  %v2006_v41 = vadd.f32 %v2005_v38, %v2004_v37 }
 0x2ab   : > { %v1635_v43 = vadd.f32 %v2942_v61, %v1577_v40  ;;  %v1580_v23 = vadd.f32 %v2006_v41, %v1483_v39  ;;  %v1943_v24 = vpop.f32.mrb[44].mxu0 }
 0x2ac   : > { %v1944_v44 = vpop.f32.mrb[45].mxu0 }
 0x2ad   : > { %1651 = vst [vmem:[%s2946_s28 + $0x20] sm:$0xff] %v1635_v43  ;;  %v1636_v45 = vadd.f32 %v2942_v61, %v1580_v23  ;;  %v1945_v46 = vadd.f32 %v1944_v44, %v1943_v24  ;;  %v1946_v25 = vpop.f32.mrb[46].mxu0  ;;  %v2007_v47 = vpop.f32.mrb[44].mxu1 }
 0x2ae   : > { %v1947_v26 = vpop.f32.mrb[47].mxu0  ;;  %v2008_v48 = vpop.f32.mrb[45].mxu1 }
 0x2af   : > { %1652 = vst [vmem:[%s2946_s28 + $0x28] sm:$0xff] %v1636_v45  ;;  %v1488_v49 = vadd.f32 %v1945_v46, %v2937_v51  ;;  %v1948_v50 = vadd.f32 %v1947_v26, %v1946_v25  ;;  %v2009_v52 = vadd.f32 %v2008_v48, %v2007_v47  ;;  %v2010_v53 = vpop.f32.mrb[46].mxu1 }
 0x2b0   : > { %v2011_v54 = vpop.f32.mrb[47].mxu1 }
 0x2b1   : > { %v1491_v55 = vadd.f32 %v1948_v50, %v2937_v51  ;;  %v1585_v56 = vadd.f32 %v2009_v52, %v1488_v49  ;;  %v2012_v57 = vadd.f32 %v2011_v54, %v2010_v53 }
 0x2b3   : > { %v1637_v58 = vadd.f32 %v2942_v61, %v1585_v56  ;;  %v1588_v59 = vadd.f32 %v2012_v57, %v1491_v55  ;;  %v1949_v60 = vpop.f32.mrb[48].mxu0 }
 0x2b4   : > { %v1950_v42 = vpop.f32.mrb[49].mxu0 }
 0x2b5   : > { %1653 = vst [vmem:[%s2946_s28 + $0x30] sm:$0xff] %v1637_v58  ;;  %v1638_v62 = vadd.f32 %v2942_v61, %v1588_v59  ;;  %v1951_v63 = vadd.f32 %v1950_v42, %v1949_v60  ;;  %v1952_v1 = vpop.f32.mrb[50].mxu0  ;;  %v2013_v2 = vpop.f32.mrb[48].mxu1 }
 0x2b6   : > { %v1953_v3 = vpop.f32.mrb[51].mxu0  ;;  %v2014_v4 = vpop.f32.mrb[49].mxu1 }
 0x2b7   : > { %1654 = vst [vmem:[%s2946_s28 + $0x38] sm:$0xff] %v1638_v62  ;;  %v1496_v5 = vadd.f32 %v1951_v63, %v2937_v51  ;;  %v1954_v6 = vadd.f32 %v1953_v3, %v1952_v1  ;;  %v2015_v7 = vadd.f32 %v2014_v4, %v2013_v2  ;;  %v2016_v20 = vpop.f32.mrb[50].mxu1 }
 0x2b8   : > { %v2017_v8 = vpop.f32.mrb[51].mxu1 }
 0x2b9   : > { %v1499_v9 = vadd.f32 %v1954_v6, %v2937_v51  ;;  %v1593_v10 = vadd.f32 %v2015_v7, %v1496_v5  ;;  %v2018_v11 = vadd.f32 %v2017_v8, %v2016_v20 }
 0x2bb   : > { %v1639_v12 = vadd.f32 %v2942_v61, %v1593_v10  ;;  %v1596_v13 = vadd.f32 %v2018_v11, %v1499_v9  ;;  %v1955_v14 = vpop.f32.mrb[52].mxu0 }
 0x2bc   : > { %v1956_v15 = vpop.f32.mrb[53].mxu0 }
 0x2bd   : > { %1655 = vst [vmem:[%s2946_s28 + $0x40] sm:$0xff] %v1639_v12  ;;  %v1640_v16 = vadd.f32 %v2942_v61, %v1596_v13  ;;  %v1957_v17 = vadd.f32 %v1956_v15, %v1955_v14  ;;  %v1958_v18 = vpop.f32.mrb[54].mxu0  ;;  %v2019_v19 = vpop.f32.mrb[52].mxu1 }
 0x2be   : > { %v1959_v0 = vpop.f32.mrb[55].mxu0  ;;  %v2020_v21 = vpop.f32.mrb[53].mxu1 }
 0x2bf   : > { %1656 = vst [vmem:[%s2946_s28 + $0x48] sm:$0xff] %v1640_v16  ;;  %v1504_v22 = vadd.f32 %v1957_v17, %v2937_v51  ;;  %v1960_v27 = vadd.f32 %v1959_v0, %v1958_v18  ;;  %v2021_v28 = vadd.f32 %v2020_v21, %v2019_v19  ;;  %v2022_v29 = vpop.f32.mrb[54].mxu1 }
 0x2c0   : > { %v2023_v30 = vpop.f32.mrb[55].mxu1 }
 0x2c1   : > { %v1507_v31 = vadd.f32 %v1960_v27, %v2937_v51  ;;  %v1601_v32 = vadd.f32 %v2021_v28, %v1504_v22  ;;  %v2024_v33 = vadd.f32 %v2023_v30, %v2022_v29 }
 0x2c3   : > { %v1641_v34 = vadd.f32 %v2942_v61, %v1601_v32  ;;  %v1604_v35 = vadd.f32 %v2024_v33, %v1507_v31  ;;  %v1961_v36 = vpop.f32.mrb[56].mxu0 }
 0x2c4   : > { %v1962_v37 = vpop.f32.mrb[57].mxu0 }
 0x2c5   : > { %1657 = vst [vmem:[%s2946_s28 + $0x50] sm:$0xff] %v1641_v34  ;;  %v1642_v38 = vadd.f32 %v2942_v61, %v1604_v35  ;;  %v1963_v39 = vadd.f32 %v1962_v37, %v1961_v36  ;;  %v1964_v40 = vpop.f32.mrb[58].mxu0  ;;  %v2025_v41 = vpop.f32.mrb[56].mxu1 }
 0x2c6   : > { %v1965_v43 = vpop.f32.mrb[59].mxu0  ;;  %v2026_v23 = vpop.f32.mrb[57].mxu1 }
 0x2c7   : > { %1658 = vst [vmem:[%s2946_s28 + $0x58] sm:$0xff] %v1642_v38  ;;  %v1512_v24 = vadd.f32 %v1963_v39, %v2937_v51  ;;  %v1966_v44 = vadd.f32 %v1965_v43, %v1964_v40  ;;  %v2027_v45 = vadd.f32 %v2026_v23, %v2025_v41  ;;  %v2028_v46 = vpop.f32.mrb[58].mxu1 }
 0x2c8   : > { %v2029_v25 = vpop.f32.mrb[59].mxu1 }
 0x2c9   : > { %v1515_v47 = vadd.f32 %v1966_v44, %v2937_v51  ;;  %v1609_v26 = vadd.f32 %v2027_v45, %v1512_v24  ;;  %v2030_v48 = vadd.f32 %v2029_v25, %v2028_v46 }
 0x2cb   : > { %v1643_v49 = vadd.f32 %v2942_v61, %v1609_v26  ;;  %v1612_v50 = vadd.f32 %v2030_v48, %v1515_v47  ;;  %v1967_v52 = vpop.f32.mrb[60].mxu0 }
 0x2cc   : > { %v1968_v53 = vpop.f32.mrb[61].mxu0 }
 0x2cd   : > { %1659 = vst [vmem:[%s2946_s28 + $0x60] sm:$0xff] %v1643_v49  ;;  %v1644_v54 = vadd.f32 %v2942_v61, %v1612_v50  ;;  %v1969_v55 = vadd.f32 %v1968_v53, %v1967_v52  ;;  %v1970_v56 = vpop.f32.mrb[62].mxu0  ;;  %v2031_v57 = vpop.f32.mrb[60].mxu1 }
 0x2ce   : > { %v1971_v58 = vpop.f32.mrb[63].mxu0  ;;  %v2032_v59 = vpop.f32.mrb[61].mxu1 }
 0x2cf   : > { %1660 = vst [vmem:[%s2946_s28 + $0x68] sm:$0xff] %v1644_v54  ;;  %v1520_v60 = vadd.f32 %v1969_v55, %v2937_v51  ;;  %v1972_v42 = vadd.f32 %v1971_v58, %v1970_v56  ;;  %v2033_v62 = vadd.f32 %v2032_v59, %v2031_v57  ;;  %v2034_v63 = vpop.f32.mrb[62].mxu1 }
 0x2d0   : > { %v2035_v1 = vpop.f32.mrb[63].mxu1 }
 0x2d1   : > { %v1523_v2 = vadd.f32 %v1972_v42, %v2937_v51  ;;  %v1617_v3 = vadd.f32 %v2033_v62, %v1520_v60  ;;  %v2036_v4 = vadd.f32 %v2035_v1, %v2034_v63 }
 0x2d3   : > { %v1645_v5 = vadd.f32 %v2942_v61, %v1617_v3  ;;  %v1620_v6 = vadd.f32 %v2036_v4, %v1523_v2 }
 0x2d5   : > { %1661 = vst [vmem:[%s2946_s28 + $0x70] sm:$0xff] %v1645_v5  ;;  %v1646_v51 = vadd.f32 %v2942_v61, %v1620_v6 }
 0x2d7   : > { %1662 = vst [vmem:[%s2946_s28 + $0x78] sm:$0xff] %v1646_v51 }
 0x2d8   : > { %2379 = shalt.err (!%p2376_p3)
}
 0x2d9   : > { %s2380_s7 = scalar_lea.hbm %s2995_s11, 2048  ;;  %s2384_s13 = scalar_lea.hbm %s3093_s21, 4096 }
 0x2da   : > { %p2381_p9 = scmp.ne.s32.totalorder %s2995_s11, %s2380_s7  ;;  %p2385_p7 = scmp.lt.u32.totalorder %s2995_s11, %s3093_s21 }
 0x2db   : > { %p2386_p12 = scmp.lt.u32.totalorder %s2384_s13, %s2380_s7  ;;  %p2388_p1 = scmp.lt.u32.totalorder %s2380_s7, %s2995_s11 }
 0x2dc   : > { %p2382_p13 = pnand %p2381_p9, %p2665_p5 }
 0x2dd   : > { %p2387_p2 = por %p2386_p12, %p2385_p7 }
 0x2de   : > { %p2383_p11 = pneg %p2382_p13 }
 0x2df   : > { %p2389_p4 = por %p2388_p1, %p2387_p2 }
 0x2e1   : > { %p2390_p0 = pnand %p2389_p4, %p2383_p11 }
 0x2e3   : > { %2393 = shalt.err (!%p2390_p0)
}
 0x2e4   : > { %s2457_s5 = smov 128   ;;  %s2458_s29 = smov 8  }
 0x2e5   : > { %2053 = dma.vmem_to_hbm [thread:$0]  (%p2665_p5), %s2997_s1, 2048, %s2995_s11, %s1664_s22, %s2457_s5, %s2457_s5, %s2458_s29  }
 0x2e6 PF: > { %s3094_s28 = sld [smem:[#allocation18_spill]]  ;;  %s3095_s30 = sld [smem:[#allocation19_spill]] }
 0x2e7   : > { %p3097_p6 = scmp.ge.s32.totalorder %s2444_s18, 2 }
 0x2ec   : > { %s1692_s26 = sand.u32 1, %s3094_s28   ;;  %p3096_p8 = scmp.ne.s32.totalorder %s3095_s30, 0 }
 0x2ed   : > { %s1693_s27 = scalar_lea.sflag [#allocation5], %s1692_s26 }
 0x2ee   : > { %p2073_p10 = pnand %p3097_p6, %p3096_p8 }
 0x2f0   : > { %2427 = dma.done.wait (!%p2073_p10), %s1693_s27, 2048  }
 0x2f1   : > { %2429 = vsyncadd (!%p2073_p10), %s1693_s27, 4294965248  ;;  %s3098_s0 = sld [smem:[#allocation20_spill]]  ;;  %p28_p3 = scmp.ge.s32.totalorder %s2651_s10, 4  }
 0x2f2   : > { %s3099_s15 = smov %s2436_s16  ;;  %s3100_s16 = smov %s2440_s17 }
 0x2f3   : > { %s3102_s18 = smov %s2651_s10  ;;  %30 = sbr.rel (!%p28_p3) target bundleno = 15 (0xf), region = 130 }
 0x2f7   : > { %s3101_s17 = smov %s3098_s0 }
 0x2fa   :  { %1698 = vsyncpa [#allocation4], 1 }
 0x2fb   :  { %1700 = vsyncpa [#allocation4 + $0x1], 1 }
 0x2fc   :  { %1701 = vsyncpa [#allocation7], 1 }
 0x2fd   :  { %1703 = vsyncpa [#allocation7 + $0x1], 1 }
 0x2fe   :  { %1704 = vsyncpa [#allocation10], 1 }
 0x2ff   :  { %1705 = vsyncpa [#allocation5], 1 }
 0x300   :  { %1707 = vsyncpa [#allocation5 + $0x1], 1 }

</bundles_post_ra>
